<compile_context>
chip_gen: v7x
topology: tpu7x:2x2x1
jax: 0.10.0
libtpu: 0.0.40
codegen_flags: <defaults>
</compile_context>

<pallas_src>
import functools

import jax
import jax.numpy as jnp
from jax.experimental import pallas as pl
from jax.experimental.pallas import tpu as pltpu


# ----------------------------------------------------------------------------
# Pallas kernel
# ----------------------------------------------------------------------------
def tdnn_bottle_kernel(x_ref,
                       w1_ref, b1_ref, s1_ref, t1_ref,
                       w2p_ref, w2c_ref, w2n_ref, b2_ref,
                       w3_ref, b3_ref, s3_ref, t3_ref,
                       o_ref, *, t_valid):
    bb, tt, cp = x_ref.shape
    rows = bb * tt
    x = x_ref[...].reshape(rows, cp)                         # (rows, Cp1) f32

    # ---- tdnn1: 1x1 conv (+bias) -> ReLU -> BN(eval affine) -----------------
    h = jnp.dot(x.astype(jnp.bfloat16), w1_ref[...],
                preferred_element_type=jnp.float32)
    h = jnp.maximum(h + b1_ref[...], 0.0) * s1_ref[...] + t1_ref[...]

    # ---- tdnn2: k=3 / pad=1 grouped conv as three accumulating tap matmuls --
    # (rows, 1) time index of each flattened row; masking implements both the
    # conv zero-padding (relative to the *real* sequence length t_valid) and
    # batch-boundary isolation for the global roll over the flattened rows.
    t_idx = jax.lax.broadcasted_iota(jnp.int32, (rows, 1), 0) % tt
    h_prev = jnp.where(t_idx == 0, 0.0,
                       pltpu.roll(h, shift=1, axis=0)).astype(jnp.bfloat16)
    h_next = jnp.where(t_idx >= t_valid - 1, 0.0,
                       pltpu.roll(h, shift=rows - 1, axis=0)  # == shift -1
                       ).astype(jnp.bfloat16)
    hb = h.astype(jnp.bfloat16)

    z2 = jnp.dot(h_prev, w2p_ref[...], preferred_element_type=jnp.float32)
    z2 = z2 + jnp.dot(hb, w2c_ref[...], preferred_element_type=jnp.float32)
    z2 = z2 + jnp.dot(h_next, w2n_ref[...], preferred_element_type=jnp.float32)
    # BN2 affine is folded into W3'/b3' in the wrapper -> only bias + ReLU here.
    r2 = jnp.maximum(z2 + b2_ref[...], 0.0)

    # ---- tdnn3 (BN2 folded): 1x1 conv (+bias) -> ReLU -> BN3(eval affine) ----
    y = jnp.dot(r2.astype(jnp.bfloat16), w3_ref[...],
                preferred_element_type=jnp.float32)
    y = jnp.maximum(y + b3_ref[...], 0.0) * s3_ref[...] + t3_ref[...]

    # ---- residual (downsample=None => planes == inplanes) -------------------
    o_ref[...] = (y + x).reshape(bb, tt, cp).astype(o_ref.dtype)


# ----------------------------------------------------------------------------
# Parameter preparation (fold BN, expand grouped conv, pad lanes, pre-cast bf16)
# ----------------------------------------------------------------------------
def _round_up(n, m):
    return ((n + m - 1) // m) * m


def _affine_from_bn(bn, eps=1e-5):
    gamma, beta, mean, var = bn
    scale = gamma / jnp.sqrt(var + eps)
    return scale, beta - mean * scale


def _pad2(a, rows, cols):
    return jnp.pad(a, ((0, rows - a.shape[0]), (0, cols - a.shape[1])))


def _padrow(v, cols):
    return jnp.pad(v.reshape(1, -1), ((0, 0), (0, cols - v.shape[0])))


def prepare_kernel_params(params, groups, eps=1e-5):
    """PyTorch-layout params -> padded, folded, bf16-weight kernel params."""
    (w1, b1, bn1), (w2, b2, bn2), (w3, b3, bn3) = params
    C1 = w1.shape[0]            # inplanes
    C2 = w2.shape[0]            # 2 * inplanes
    P = w3.shape[0]             # planes
    assert P == C1, "residual path requires planes == inplanes (downsample=None)"
    assert C1 % groups == 0 and C2 % groups == 0, "groups must divide channels"

    Cp1 = _round_up(C1, 128)    # lane-dense channel padding
    Cp2 = _round_up(C2, 128)

    # tdnn1: (C1, C1, 1) -> dense (Cp1, Cp1)
    w1d = _pad2(w1[:, :, 0].T, Cp1, Cp1).astype(jnp.bfloat16)
    s1, t1 = _affine_from_bn(bn1, eps)

    # tdnn2: grouped (C2, C1//G, 3) -> three block-diagonal dense taps (Cp1, Cp2).
    # TODO(synk): density is 1/groups -> structural-zero MACs; see header TODO.
    cig, cog = C1 // groups, C2 // groups
    w2r = w2.reshape(groups, cog, cig, 3)
    taps = []
    for k in range(3):                       # tap 0/1/2 <-> prev/center/next
        dense = jnp.zeros((C1, C2), jnp.float32)
        for g in range(groups):
            dense = dense.at[g * cig:(g + 1) * cig,
                             g * cog:(g + 1) * cog].set(w2r[g, :, :, k].T)
        taps.append(_pad2(dense, Cp1, Cp2).astype(jnp.bfloat16))
    s2, t2 = _affine_from_bn(bn2, eps)

    # tdnn3: (P, C2, 1) with BN2 folded in:  W3' = diag(s2)@W3, b3' = b3 + t2@W3.
    # Padded lanes stay exactly zero (s2/t2/b3 zero-padded), preserving the
    # zero-propagation invariant through the padded channels.
    w3_base = w3[:, :, 0].T                                  # (C2, P)
    w3d = _pad2(s2[:, None] * w3_base, Cp2, Cp1).astype(jnp.bfloat16)
    b3f = b3 + t2 @ w3_base
    s3, t3 = _affine_from_bn(bn3, eps)

    kparams = (
        w1d, _padrow(b1, Cp1), _padrow(s1, Cp1), _padrow(t1, Cp1),
        taps[0], taps[1], taps[2], _padrow(b2, Cp2),
        w3d, _padrow(b3f, Cp1), _padrow(s3, Cp1), _padrow(t3, Cp1),
    )
    return Cp1, Cp2, kparams


# ----------------------------------------------------------------------------
# Block-size heuristic (VMEM-budgeted; keeps the grid long enough to pipeline)
# ----------------------------------------------------------------------------
def _choose_block_b(B, Tp, Cp1, Cp2, vmem_budget_bytes=24 << 20):
    # Approximate live bytes per flattened row inside one grid step:
    #   in + out blocks, double buffered, f32     : 2 * 2 * 4 * Cp1
    #   h f32 + 3 bf16 tap operands               : 4*Cp1 + 3*2*Cp1
    #   z2 accumulator + relu copy f32 + bf16 op  : 2*4*Cp2 + 2*Cp2
    bytes_per_row = 16 * Cp1 + 10 * Cp1 + 10 * Cp2
    rows_cap = max(8, vmem_budget_bytes // bytes_per_row)
    rows_target = int(min(2048, rows_cap))
    bb = max(1, min(B, rows_target // max(Tp, 1)))
    # keep >= min(8, B) grid steps: lets BlockSpec double-buffering hide HBM
    # traffic on single-TC v5e/v6e and gives both v7x TensorCores work.
    bb = min(bb, max(1, B // min(8, max(B, 1))))
    while B % bb:
        bb -= 1
    return bb


# ----------------------------------------------------------------------------
# Wrapper
# ----------------------------------------------------------------------------
def tdnn_bottle_block(x, params, groups=32, block_b=None):
    """x: (B, T, inplanes) f32 -> (B, T, planes)."""
    B, T, C_in = x.shape
    Cp1, Cp2, kparams = prepare_kernel_params(params, groups)
    Tp = _round_up(T, 8)     # tile-aligned merged (bb*T) sublane dim

    aligned = (Cp1 == C_in) and (Tp == T)
    if aligned:
        xp = x               # no extra HBM pass when already 128/8-aligned
    else:
        xp = jnp.pad(x, ((0, 0), (0, Tp - T), (0, Cp1 - C_in)))
    # TODO(synk): for fused consumers, return the padded (B, Tp, Cp1) layout
    # directly to avoid the pad/slice HBM passes when C_in % 128 != 0.

    if block_b is None:
        block_b = _choose_block_b(B, Tp, Cp1, Cp2)
    assert B % block_b == 0
    grid = (B // block_b,)

    kernel = functools.partial(tdnn_bottle_kernel, t_valid=T)

    def _const_spec(a, single_buffer):
        n = a.ndim
        if single_buffer:
            # constant block index -> a second buffer only wastes VMEM
            return pl.BlockSpec(a.shape, lambda i, n=n: (0,) * n,
                                pipeline_mode=pl.Buffered(1))
        return pl.BlockSpec(a.shape, lambda i, n=n: (0,) * n)

    def _call(single_buffer_consts):
        return pl.pallas_call(
            kernel,
            out_shape=jax.ShapeDtypeStruct((B, Tp, Cp1), x.dtype),
            grid=grid,
            in_specs=[pl.BlockSpec((block_b, Tp, Cp1), lambda i: (i, 0, 0))]
                     + [_const_spec(a, single_buffer_consts) for a in kparams],
            out_specs=pl.BlockSpec((block_b, Tp, Cp1), lambda i: (i, 0, 0)),
            compiler_params=pltpu.CompilerParams(
                dimension_semantics=("parallel",),
                vmem_limit_bytes=48 * 1024 * 1024,
            ),
        )(xp, *kparams)

    try:
        out = _call(True)          # single-buffered constants (saves VMEM)
    except Exception:              # pragma: no cover - jax w/o Buffered(1)
        out = _call(False)

    if aligned:
        return out
    return out[:, :T, :C_in]


# ----------------------------------------------------------------------------
# Deterministic "PyTorch-layout" parameter init
# ----------------------------------------------------------------------------
def init_params(key, inplanes, planes, groups):
    C1, C2, P = inplanes, 2 * inplanes, planes
    ks = jax.random.split(key, 9)

    def bn(k, c):
        k1, k2, k3, k4 = jax.random.split(k, 4)
        gamma = 1.0 + 0.1 * jax.random.normal(k1, (c,), jnp.float32)
        beta = 0.1 * jax.random.normal(k2, (c,), jnp.float32)
        mean = 0.1 * jax.random.normal(k3, (c,), jnp.float32)
        var = jnp.abs(jax.random.normal(k4, (c,), jnp.float32)) + 0.5
        return (gamma, beta, mean, var)

    w1 = 0.1 * jax.random.normal(ks[0], (C1, C1, 1), jnp.float32)
    b1 = 0.1 * jax.random.normal(ks[1], (C1,), jnp.float32)
    w2 = 0.1 * jax.random.normal(ks[2], (C2, C1 // groups, 3), jnp.float32)
    b2 = 0.1 * jax.random.normal(ks[3], (C2,), jnp.float32)
    w3 = 0.1 * jax.random.normal(ks[4], (P, C2, 1), jnp.float32)
    b3 = 0.1 * jax.random.normal(ks[5], (P,), jnp.float32)
    return ((w1, b1, bn(ks[6], C1)),
            (w2, b2, bn(ks[7], C2)),
            (w3, b3, bn(ks[8], P)))


# ----------------------------------------------------------------------------
# Pure-JAX float32 reference (true eval-mode PyTorch semantics)
# ----------------------------------------------------------------------------
def reference(x, params, groups, eps=1e-5):
    (w1, b1, bn1), (w2, b2, bn2), (w3, b3, bn3) = params
    hi = jax.lax.Precision.HIGHEST

    def post(z, b, bn):                       # +bias -> ReLU -> BN(eval affine)
        gamma, beta, mean, var = bn
        s = gamma / jnp.sqrt(var + eps)
        return jnp.maximum(z + b, 0.0) * s + (beta - mean * s)

    # tdnn1 (context 1)
    h = post(jnp.einsum("btc,oc->bto", x, w1[:, :, 0], precision=hi), b1, bn1)

    # tdnn2 (context 3, padding 1, grouped)
    B, T, C1 = h.shape
    C2 = w2.shape[0]
    cig, cog = C1 // groups, C2 // groups
    hp = jnp.pad(h, ((0, 0), (1, 1), (0, 0)))
    w2r = w2.reshape(groups, cog, cig, 3)
    z = jnp.zeros((B, T, groups, cog), jnp.float32)
    for k in range(3):                        # tap 0/1/2 -> t-1 / t / t+1
        tap = hp[:, k:k + T].reshape(B, T, groups, cig)
        z = z + jnp.einsum("btgi,goi->btgo", tap, w2r[..., k], precision=hi)
    g = post(z.reshape(B, T, C2), b2, bn2)

    # tdnn3 (context 1)
    y = post(jnp.einsum("btc,oc->bto", g, w3[:, :, 0], precision=hi), b3, bn3)

    return y + x                              # residual, no final activation


# ----------------------------------------------------------------------------
if __name__ == "__main__":
    B, T = 4, 16
    inplanes = planes = 32
    groups = 32                               # module default (groups=32)

    key = jax.random.PRNGKey(0)
    kx, kp = jax.random.split(key)
    x = jax.random.normal(kx, (B, T, inplanes), jnp.float32)
    params = init_params(kp, inplanes, planes, groups)

    out = tdnn_bottle_block(x, params, groups=groups)
    out = jax.block_until_ready(out)

    ref = reference(x, params, groups)
    assert out.shape == (B, T, planes)
    assert bool(jnp.all(jnp.isfinite(out)))
    # bf16 MXU matmuls vs a true-f32 reference: tolerance sized for bf16 rounding.
    max_err = float(jnp.max(jnp.abs(out - ref)))
    assert jnp.allclose(out, ref, atol=3e-2, rtol=3e-2), f"mismatch: {max_err}"
    print("KERNEL_OK")
</pallas_src>

<mosaic_0001>
module attributes {stable_mosaic.version = 11 : i64} {
  func.func @tdnn_bottle_kernel(%arg0: i32, %arg1: memref<1x16x128xf32, #tpu.memory_space<vmem>>, %arg2: memref<128x128xbf16, #tpu.memory_space<vmem>>, %arg3: memref<1x128xf32, #tpu.memory_space<vmem>>, %arg4: memref<1x128xf32, #tpu.memory_space<vmem>>, %arg5: memref<1x128xf32, #tpu.memory_space<vmem>>, %arg6: memref<128x128xbf16, #tpu.memory_space<vmem>>, %arg7: memref<128x128xbf16, #tpu.memory_space<vmem>>, %arg8: memref<128x128xbf16, #tpu.memory_space<vmem>>, %arg9: memref<1x128xf32, #tpu.memory_space<vmem>>, %arg10: memref<128x128xbf16, #tpu.memory_space<vmem>>, %arg11: memref<1x128xf32, #tpu.memory_space<vmem>>, %arg12: memref<1x128xf32, #tpu.memory_space<vmem>>, %arg13: memref<1x128xf32, #tpu.memory_space<vmem>>, %arg14: memref<1x16x128xf32, #tpu.memory_space<vmem>>) attributes {dimension_semantics = [#tpu.dimension_semantics<parallel>], iteration_bounds = array<i64: 4>, scalar_prefetch = 0 : i64, scratch_operands = 0 : i64, tpu.core_type = #tpu.core_type<tc>, window_params = [{transform_indices = @transform_0, window_bounds = array<i64: 1, 16, 128>}, {pipeline_mode = #tpu.pipeline_mode<synchronous>, transform_indices = @transform_1, window_bounds = array<i64: 128, 128>}, {pipeline_mode = #tpu.pipeline_mode<synchronous>, transform_indices = @transform_2, window_bounds = array<i64: 1, 128>}, {pipeline_mode = #tpu.pipeline_mode<synchronous>, transform_indices = @transform_3, window_bounds = array<i64: 1, 128>}, {pipeline_mode = #tpu.pipeline_mode<synchronous>, transform_indices = @transform_4, window_bounds = array<i64: 1, 128>}, {pipeline_mode = #tpu.pipeline_mode<synchronous>, transform_indices = @transform_5, window_bounds = array<i64: 128, 128>}, {pipeline_mode = #tpu.pipeline_mode<synchronous>, transform_indices = @transform_6, window_bounds = array<i64: 128, 128>}, {pipeline_mode = #tpu.pipeline_mode<synchronous>, transform_indices = @transform_7, window_bounds = array<i64: 128, 128>}, {pipeline_mode = #tpu.pipeline_mode<synchronous>, transform_indices = @transform_8, window_bounds = array<i64: 1, 128>}, {pipeline_mode = #tpu.pipeline_mode<synchronous>, transform_indices = @transform_9, window_bounds = array<i64: 128, 128>}, {pipeline_mode = #tpu.pipeline_mode<synchronous>, transform_indices = @transform_10, window_bounds = array<i64: 1, 128>}, {pipeline_mode = #tpu.pipeline_mode<synchronous>, transform_indices = @transform_11, window_bounds = array<i64: 1, 128>}, {pipeline_mode = #tpu.pipeline_mode<synchronous>, transform_indices = @transform_12, window_bounds = array<i64: 1, 128>}, {transform_indices = @transform_13, window_bounds = array<i64: 1, 16, 128>}]} {
    %c0 = arith.constant 0 : index
    %c0_0 = arith.constant 0 : index
    %c0_1 = arith.constant 0 : index
    %0 = vector.load %arg1[%c0, %c0_0, %c0_1] : memref<1x16x128xf32, #tpu.memory_space<vmem>>, vector<1x16x128xf32>
    %1 = vector.shape_cast %0 : vector<1x16x128xf32> to vector<16x128xf32>
    %2 = arith.truncf %1 : vector<16x128xf32> to vector<16x128xbf16>
    %c0_2 = arith.constant 0 : index
    %c0_3 = arith.constant 0 : index
    %3 = vector.load %arg2[%c0_2, %c0_3] : memref<128x128xbf16, #tpu.memory_space<vmem>>, vector<128x128xbf16>
    %cst = arith.constant dense<0.000000e+00> : vector<16x128xf32>
    %4 = tpu.matmul %2, %3, %cst {dimension_numbers = #tpu.dot_dimension_numbers<[1], [0], [0], [1], [0, 0, 1, 1], [], []>} : vector<16x128xbf16>, vector<128x128xbf16>, vector<16x128xf32> -> vector<16x128xf32>
    %c0_4 = arith.constant 0 : index
    %c0_5 = arith.constant 0 : index
    %5 = vector.load %arg3[%c0_4, %c0_5] : memref<1x128xf32, #tpu.memory_space<vmem>>, vector<1x128xf32>
    %6 = vector.broadcast %5 : vector<1x128xf32> to vector<16x128xf32>
    %7 = arith.addf %4, %6 : vector<16x128xf32>
    %cst_6 = arith.constant 0.000000e+00 : f32
    %8 = vector.broadcast %cst_6 : f32 to vector<16x128xf32>
    %9 = arith.maximumf %7, %8 : vector<16x128xf32>
    %c0_7 = arith.constant 0 : index
    %c0_8 = arith.constant 0 : index
    %10 = vector.load %arg4[%c0_7, %c0_8] : memref<1x128xf32, #tpu.memory_space<vmem>>, vector<1x128xf32>
    %11 = vector.broadcast %10 : vector<1x128xf32> to vector<16x128xf32>
    %12 = arith.mulf %9, %11 : vector<16x128xf32>
    %c0_9 = arith.constant 0 : index
    %c0_10 = arith.constant 0 : index
    %13 = vector.load %arg5[%c0_9, %c0_10] : memref<1x128xf32, #tpu.memory_space<vmem>>, vector<1x128xf32>
    %14 = vector.broadcast %13 : vector<1x128xf32> to vector<16x128xf32>
    %15 = arith.addf %12, %14 : vector<16x128xf32>
    %16 = tpu.iota {dimensions = array<i32: 0>} : vector<16x1xi32>
    %c16_i32 = arith.constant 16 : i32
    %c0_i32 = arith.constant 0 : i32
    %17 = arith.cmpi eq, %c16_i32, %c0_i32 : i32
    %c1_i32 = arith.constant 1 : i32
    %18 = arith.select %17, %c1_i32, %c16_i32 : i32
    %19 = vector.broadcast %18 : i32 to vector<16x1xi32>
    %20 = arith.remsi %16, %19 : vector<16x1xi32>
    %c0_i32_11 = arith.constant 0 : i32
    %21 = vector.broadcast %c0_i32_11 : i32 to vector<16x1xi32>
    %22 = arith.cmpi ne, %20, %21 : vector<16x1xi32>
    %c0_i32_12 = arith.constant 0 : i32
    %23 = vector.broadcast %c0_i32_12 : i32 to vector<16x1xi32>
    %24 = arith.cmpi slt, %20, %23 : vector<16x1xi32>
    %c0_i32_13 = arith.constant 0 : i32
    %25 = arith.cmpi slt, %18, %c0_i32_13 : i32
    %26 = vector.broadcast %25 : i1 to vector<16x1xi1>
    %27 = vector.broadcast %26 : vector<16x1xi1> to vector<16x1xi1>
    %28 = arith.xori %24, %27 : vector<16x1xi1>
    %29 = arith.andi %28, %22 : vector<16x1xi1>
    %30 = vector.broadcast %18 : i32 to vector<16x1xi32>
    %31 = arith.addi %20, %30 : vector<16x1xi32>
    %32 = arith.select %29, %31, %20 : vector<16x1xi1>, vector<16x1xi32>
    %c0_i32_14 = arith.constant 0 : i32
    %33 = vector.broadcast %c0_i32_14 : i32 to vector<16x1xi32>
    %34 = arith.cmpi eq, %32, %33 : vector<16x1xi32>
    %c1_i32_15 = arith.constant 1 : i32
    %35 = tpu.dynamic_rotate %15 by %c1_i32_15 dim 0 : vector<16x128xf32>, i32 -> vector<16x128xf32>
    %cst_16 = arith.constant 0.000000e+00 : f32
    %36 = vector.shape_cast %34 : vector<16x1xi1> to vector<16x1xi1>
    %37 = vector.broadcast %36 : vector<16x1xi1> to vector<16x128xi1>
    %38 = vector.broadcast %cst_16 : f32 to vector<16x128xf32>
    %39 = arith.select %37, %38, %35 : vector<16x128xi1>, vector<16x128xf32>
    %40 = arith.truncf %39 : vector<16x128xf32> to vector<16x128xbf16>
    %c15_i32 = arith.constant 15 : i32
    %41 = vector.broadcast %c15_i32 : i32 to vector<16x1xi32>
    %42 = arith.cmpi sge, %32, %41 : vector<16x1xi32>
    %c15_i32_17 = arith.constant 15 : i32
    %43 = tpu.dynamic_rotate %15 by %c15_i32_17 dim 0 : vector<16x128xf32>, i32 -> vector<16x128xf32>
    %cst_18 = arith.constant 0.000000e+00 : f32
    %44 = vector.shape_cast %42 : vector<16x1xi1> to vector<16x1xi1>
    %45 = vector.broadcast %44 : vector<16x1xi1> to vector<16x128xi1>
    %46 = vector.broadcast %cst_18 : f32 to vector<16x128xf32>
    %47 = arith.select %45, %46, %43 : vector<16x128xi1>, vector<16x128xf32>
    %48 = arith.truncf %47 : vector<16x128xf32> to vector<16x128xbf16>
    %49 = arith.truncf %15 : vector<16x128xf32> to vector<16x128xbf16>
    %c0_19 = arith.constant 0 : index
    %c0_20 = arith.constant 0 : index
    %50 = vector.load %arg6[%c0_19, %c0_20] : memref<128x128xbf16, #tpu.memory_space<vmem>>, vector<128x128xbf16>
    %cst_21 = arith.constant dense<0.000000e+00> : vector<16x128xf32>
    %51 = tpu.matmul %40, %50, %cst_21 {dimension_numbers = #tpu.dot_dimension_numbers<[1], [0], [0], [1], [0, 0, 1, 1], [], []>} : vector<16x128xbf16>, vector<128x128xbf16>, vector<16x128xf32> -> vector<16x128xf32>
    %c0_22 = arith.constant 0 : index
    %c0_23 = arith.constant 0 : index
    %52 = vector.load %arg7[%c0_22, %c0_23] : memref<128x128xbf16, #tpu.memory_space<vmem>>, vector<128x128xbf16>
    %cst_24 = arith.constant dense<0.000000e+00> : vector<16x128xf32>
    %53 = tpu.matmul %49, %52, %cst_24 {dimension_numbers = #tpu.dot_dimension_numbers<[1], [0], [0], [1], [0, 0, 1, 1], [], []>} : vector<16x128xbf16>, vector<128x128xbf16>, vector<16x128xf32> -> vector<16x128xf32>
    %54 = arith.addf %51, %53 : vector<16x128xf32>
    %c0_25 = arith.constant 0 : index
    %c0_26 = arith.constant 0 : index
    %55 = vector.load %arg8[%c0_25, %c0_26] : memref<128x128xbf16, #tpu.memory_space<vmem>>, vector<128x128xbf16>
    %cst_27 = arith.constant dense<0.000000e+00> : vector<16x128xf32>
    %56 = tpu.matmul %48, %55, %cst_27 {dimension_numbers = #tpu.dot_dimension_numbers<[1], [0], [0], [1], [0, 0, 1, 1], [], []>} : vector<16x128xbf16>, vector<128x128xbf16>, vector<16x128xf32> -> vector<16x128xf32>
    %57 = arith.addf %54, %56 : vector<16x128xf32>
    %c0_28 = arith.constant 0 : index
    %c0_29 = arith.constant 0 : index
    %58 = vector.load %arg9[%c0_28, %c0_29] : memref<1x128xf32, #tpu.memory_space<vmem>>, vector<1x128xf32>
    %59 = vector.broadcast %58 : vector<1x128xf32> to vector<16x128xf32>
    %60 = arith.addf %57, %59 : vector<16x128xf32>
    %cst_30 = arith.constant 0.000000e+00 : f32
    %61 = vector.broadcast %cst_30 : f32 to vector<16x128xf32>
    %62 = arith.maximumf %60, %61 : vector<16x128xf32>
    %63 = arith.truncf %62 : vector<16x128xf32> to vector<16x128xbf16>
    %c0_31 = arith.constant 0 : index
    %c0_32 = arith.constant 0 : index
    %64 = vector.load %arg10[%c0_31, %c0_32] : memref<128x128xbf16, #tpu.memory_space<vmem>>, vector<128x128xbf16>
    %cst_33 = arith.constant dense<0.000000e+00> : vector<16x128xf32>
    %65 = tpu.matmul %63, %64, %cst_33 {dimension_numbers = #tpu.dot_dimension_numbers<[1], [0], [0], [1], [0, 0, 1, 1], [], []>} : vector<16x128xbf16>, vector<128x128xbf16>, vector<16x128xf32> -> vector<16x128xf32>
    %c0_34 = arith.constant 0 : index
    %c0_35 = arith.constant 0 : index
    %66 = vector.load %arg11[%c0_34, %c0_35] : memref<1x128xf32, #tpu.memory_space<vmem>>, vector<1x128xf32>
    %67 = vector.broadcast %66 : vector<1x128xf32> to vector<16x128xf32>
    %68 = arith.addf %65, %67 : vector<16x128xf32>
    %cst_36 = arith.constant 0.000000e+00 : f32
    %69 = vector.broadcast %cst_36 : f32 to vector<16x128xf32>
    %70 = arith.maximumf %68, %69 : vector<16x128xf32>
    %c0_37 = arith.constant 0 : index
    %c0_38 = arith.constant 0 : index
    %71 = vector.load %arg12[%c0_37, %c0_38] : memref<1x128xf32, #tpu.memory_space<vmem>>, vector<1x128xf32>
    %72 = vector.broadcast %71 : vector<1x128xf32> to vector<16x128xf32>
    %73 = arith.mulf %70, %72 : vector<16x128xf32>
    %c0_39 = arith.constant 0 : index
    %c0_40 = arith.constant 0 : index
    %74 = vector.load %arg13[%c0_39, %c0_40] : memref<1x128xf32, #tpu.memory_space<vmem>>, vector<1x128xf32>
    %75 = vector.broadcast %74 : vector<1x128xf32> to vector<16x128xf32>
    %76 = arith.addf %73, %75 : vector<16x128xf32>
    %77 = arith.addf %76, %1 : vector<16x128xf32>
    %78 = vector.shape_cast %77 : vector<16x128xf32> to vector<1x16x128xf32>
    %c0_41 = arith.constant 0 : index
    %c0_42 = arith.constant 0 : index
    %c0_43 = arith.constant 0 : index
    %79 = vector.load %arg14[%c0_41, %c0_42, %c0_43] : memref<1x16x128xf32, #tpu.memory_space<vmem>>, vector<1x16x128xf32>
    tpu.vector_store %arg14[%c0_41, %c0_42, %c0_43], %78 {strides = array<i32>} : memref<1x16x128xf32, #tpu.memory_space<vmem>>, vector<1x16x128xf32>,
    return
  }
  func.func @transform_0(%arg0: i32) -> (i32, i32, i32) {
    %c0_i32 = arith.constant 0 : i32
    %c0_i32_0 = arith.constant 0 : i32
    %c0_i32_1 = arith.constant 0 : i32
    return %arg0, %c0_i32, %c0_i32_0 : i32, i32, i32
  }
  func.func @transform_1(%arg0: i32) -> (i32, i32) {
    %c0_i32 = arith.constant 0 : i32
    %c0_i32_0 = arith.constant 0 : i32
    %c0_i32_1 = arith.constant 0 : i32
    return %c0_i32, %c0_i32_0 : i32, i32
  }
  func.func @transform_2(%arg0: i32) -> (i32, i32) {
    %c0_i32 = arith.constant 0 : i32
    %c0_i32_0 = arith.constant 0 : i32
    %c0_i32_1 = arith.constant 0 : i32
    return %c0_i32, %c0_i32_0 : i32, i32
  }
  func.func @transform_3(%arg0: i32) -> (i32, i32) {
    %c0_i32 = arith.constant 0 : i32
    %c0_i32_0 = arith.constant 0 : i32
    %c0_i32_1 = arith.constant 0 : i32
    return %c0_i32, %c0_i32_0 : i32, i32
  }
  func.func @transform_4(%arg0: i32) -> (i32, i32) {
    %c0_i32 = arith.constant 0 : i32
    %c0_i32_0 = arith.constant 0 : i32
    %c0_i32_1 = arith.constant 0 : i32
    return %c0_i32, %c0_i32_0 : i32, i32
  }
  func.func @transform_5(%arg0: i32) -> (i32, i32) {
    %c0_i32 = arith.constant 0 : i32
    %c0_i32_0 = arith.constant 0 : i32
    %c0_i32_1 = arith.constant 0 : i32
    return %c0_i32, %c0_i32_0 : i32, i32
  }
  func.func @transform_6(%arg0: i32) -> (i32, i32) {
    %c0_i32 = arith.constant 0 : i32
    %c0_i32_0 = arith.constant 0 : i32
    %c0_i32_1 = arith.constant 0 : i32
    return %c0_i32, %c0_i32_0 : i32, i32
  }
  func.func @transform_7(%arg0: i32) -> (i32, i32) {
    %c0_i32 = arith.constant 0 : i32
    %c0_i32_0 = arith.constant 0 : i32
    %c0_i32_1 = arith.constant 0 : i32
    return %c0_i32, %c0_i32_0 : i32, i32
  }
  func.func @transform_8(%arg0: i32) -> (i32, i32) {
    %c0_i32 = arith.constant 0 : i32
    %c0_i32_0 = arith.constant 0 : i32
    %c0_i32_1 = arith.constant 0 : i32
    return %c0_i32, %c0_i32_0 : i32, i32
  }
  func.func @transform_9(%arg0: i32) -> (i32, i32) {
    %c0_i32 = arith.constant 0 : i32
    %c0_i32_0 = arith.constant 0 : i32
    %c0_i32_1 = arith.constant 0 : i32
    return %c0_i32, %c0_i32_0 : i32, i32
  }
  func.func @transform_10(%arg0: i32) -> (i32, i32) {
    %c0_i32 = arith.constant 0 : i32
    %c0_i32_0 = arith.constant 0 : i32
    %c0_i32_1 = arith.constant 0 : i32
    return %c0_i32, %c0_i32_0 : i32, i32
  }
  func.func @transform_11(%arg0: i32) -> (i32, i32) {
    %c0_i32 = arith.constant 0 : i32
    %c0_i32_0 = arith.constant 0 : i32
    %c0_i32_1 = arith.constant 0 : i32
    return %c0_i32, %c0_i32_0 : i32, i32
  }
  func.func @transform_12(%arg0: i32) -> (i32, i32) {
    %c0_i32 = arith.constant 0 : i32
    %c0_i32_0 = arith.constant 0 : i32
    %c0_i32_1 = arith.constant 0 : i32
    return %c0_i32, %c0_i32_0 : i32, i32
  }
  func.func @transform_13(%arg0: i32) -> (i32, i32, i32) {
    %c0_i32 = arith.constant 0 : i32
    %c0_i32_0 = arith.constant 0 : i32
    %c0_i32_1 = arith.constant 0 : i32
    return %arg0, %c0_i32, %c0_i32_0 : i32, i32, i32
  }
}

module attributes {stable_mosaic.version = 11 : i64} {
  func.func @tdnn_bottle_kernel(%arg0: i32, %arg1: memref<1x16x128xf32, #tpu.memory_space<vmem>>, %arg2: memref<128x128xbf16, #tpu.memory_space<vmem>>, %arg3: memref<1x128xf32, #tpu.memory_space<vmem>>, %arg4: memref<1x128xf32, #tpu.memory_space<vmem>>, %arg5: memref<1x128xf32, #tpu.memory_space<vmem>>, %arg6: memref<128x128xbf16, #tpu.memory_space<vmem>>, %arg7: memref<128x128xbf16, #tpu.memory_space<vmem>>, %arg8: memref<128x128xbf16, #tpu.memory_space<vmem>>, %arg9: memref<1x128xf32, #tpu.memory_space<vmem>>, %arg10: memref<128x128xbf16, #tpu.memory_space<vmem>>, %arg11: memref<1x128xf32, #tpu.memory_space<vmem>>, %arg12: memref<1x128xf32, #tpu.memory_space<vmem>>, %arg13: memref<1x128xf32, #tpu.memory_space<vmem>>, %arg14: memref<1x16x128xf32, #tpu.memory_space<vmem>>) attributes {dimension_semantics = [#tpu.dimension_semantics<parallel>], iteration_bounds = array<i64: 4>, scalar_prefetch = 0 : i64, scratch_operands = 0 : i64, tpu.core_type = #tpu.core_type<tc>, window_params = [{transform_indices = @transform_0, window_bounds = array<i64: 1, 16, 128>}, {pipeline_mode = #tpu.pipeline_mode<synchronous>, transform_indices = @transform_1, window_bounds = array<i64: 128, 128>}, {pipeline_mode = #tpu.pipeline_mode<synchronous>, transform_indices = @transform_2, window_bounds = array<i64: 1, 128>}, {pipeline_mode = #tpu.pipeline_mode<synchronous>, transform_indices = @transform_3, window_bounds = array<i64: 1, 128>}, {pipeline_mode = #tpu.pipeline_mode<synchronous>, transform_indices = @transform_4, window_bounds = array<i64: 1, 128>}, {pipeline_mode = #tpu.pipeline_mode<synchronous>, transform_indices = @transform_5, window_bounds = array<i64: 128, 128>}, {pipeline_mode = #tpu.pipeline_mode<synchronous>, transform_indices = @transform_6, window_bounds = array<i64: 128, 128>}, {pipeline_mode = #tpu.pipeline_mode<synchronous>, transform_indices = @transform_7, window_bounds = array<i64: 128, 128>}, {pipeline_mode = #tpu.pipeline_mode<synchronous>, transform_indices = @transform_8, window_bounds = array<i64: 1, 128>}, {pipeline_mode = #tpu.pipeline_mode<synchronous>, transform_indices = @transform_9, window_bounds = array<i64: 128, 128>}, {pipeline_mode = #tpu.pipeline_mode<synchronous>, transform_indices = @transform_10, window_bounds = array<i64: 1, 128>}, {pipeline_mode = #tpu.pipeline_mode<synchronous>, transform_indices = @transform_11, window_bounds = array<i64: 1, 128>}, {pipeline_mode = #tpu.pipeline_mode<synchronous>, transform_indices = @transform_12, window_bounds = array<i64: 1, 128>}, {transform_indices = @transform_13, window_bounds = array<i64: 1, 16, 128>}]} {
    %c0 = arith.constant 0 : index
    %c0_0 = arith.constant 0 : index
    %c0_1 = arith.constant 0 : index
    %0 = vector.load %arg1[%c0, %c0_0, %c0_1] : memref<1x16x128xf32, #tpu.memory_space<vmem>>, vector<1x16x128xf32>
    %1 = vector.shape_cast %0 : vector<1x16x128xf32> to vector<16x128xf32>
    %2 = arith.truncf %1 : vector<16x128xf32> to vector<16x128xbf16>
    %c0_2 = arith.constant 0 : index
    %c0_3 = arith.constant 0 : index
    %3 = vector.load %arg2[%c0_2, %c0_3] : memref<128x128xbf16, #tpu.memory_space<vmem>>, vector<128x128xbf16>
    %cst = arith.constant dense<0.000000e+00> : vector<16x128xf32>
    %4 = tpu.matmul %2, %3, %cst {dimension_numbers = #tpu.dot_dimension_numbers<[1], [0], [0], [1], [0, 0, 1, 1], [], []>} : vector<16x128xbf16>, vector<128x128xbf16>, vector<16x128xf32> -> vector<16x128xf32>
    %c0_4 = arith.constant 0 : index
    %c0_5 = arith.constant 0 : index
    %5 = vector.load %arg3[%c0_4, %c0_5] : memref<1x128xf32, #tpu.memory_space<vmem>>, vector<1x128xf32>
    %6 = vector.broadcast %5 : vector<1x128xf32> to vector<16x128xf32>
    %7 = arith.addf %4, %6 : vector<16x128xf32>
    %cst_6 = arith.constant 0.000000e+00 : f32
    %8 = vector.broadcast %cst_6 : f32 to vector<16x128xf32>
    %9 = arith.maximumf %7, %8 : vector<16x128xf32>
    %c0_7 = arith.constant 0 : index
    %c0_8 = arith.constant 0 : index
    %10 = vector.load %arg4[%c0_7, %c0_8] : memref<1x128xf32, #tpu.memory_space<vmem>>, vector<1x128xf32>
    %11 = vector.broadcast %10 : vector<1x128xf32> to vector<16x128xf32>
    %12 = arith.mulf %9, %11 : vector<16x128xf32>
    %c0_9 = arith.constant 0 : index
    %c0_10 = arith.constant 0 : index
    %13 = vector.load %arg5[%c0_9, %c0_10] : memref<1x128xf32, #tpu.memory_space<vmem>>, vector<1x128xf32>
    %14 = vector.broadcast %13 : vector<1x128xf32> to vector<16x128xf32>
    %15 = arith.addf %12, %14 : vector<16x128xf32>
    %16 = tpu.iota {dimensions = array<i32: 0>} : vector<16x1xi32>
    %c16_i32 = arith.constant 16 : i32
    %c0_i32 = arith.constant 0 : i32
    %17 = arith.cmpi eq, %c16_i32, %c0_i32 : i32
    %c1_i32 = arith.constant 1 : i32
    %18 = arith.select %17, %c1_i32, %c16_i32 : i32
    %19 = vector.broadcast %18 : i32 to vector<16x1xi32>
    %20 = arith.remsi %16, %19 : vector<16x1xi32>
    %c0_i32_11 = arith.constant 0 : i32
    %21 = vector.broadcast %c0_i32_11 : i32 to vector<16x1xi32>
    %22 = arith.cmpi ne, %20, %21 : vector<16x1xi32>
    %c0_i32_12 = arith.constant 0 : i32
    %23 = vector.broadcast %c0_i32_12 : i32 to vector<16x1xi32>
    %24 = arith.cmpi slt, %20, %23 : vector<16x1xi32>
    %c0_i32_13 = arith.constant 0 : i32
    %25 = arith.cmpi slt, %18, %c0_i32_13 : i32
    %26 = vector.broadcast %25 : i1 to vector<16x1xi1>
    %27 = vector.broadcast %26 : vector<16x1xi1> to vector<16x1xi1>
    %28 = arith.xori %24, %27 : vector<16x1xi1>
    %29 = arith.andi %28, %22 : vector<16x1xi1>
    %30 = vector.broadcast %18 : i32 to vector<16x1xi32>
    %31 = arith.addi %20, %30 : vector<16x1xi32>
    %32 = arith.select %29, %31, %20 : vector<16x1xi1>, vector<16x1xi32>
    %c0_i32_14 = arith.constant 0 : i32
    %33 = vector.broadcast %c0_i32_14 : i32 to vector<16x1xi32>
    %34 = arith.cmpi eq, %32, %33 : vector<16x1xi32>
    %c1_i32_15 = arith.constant 1 : i32
    %35 = tpu.dynamic_rotate %15 by %c1_i32_15 dim 0 : vector<16x128xf32>, i32 -> vector<16x128xf32>
    %cst_16 = arith.constant 0.000000e+00 : f32
    %36 = vector.shape_cast %34 : vector<16x1xi1> to vector<16x1xi1>
    %37 = vector.broadcast %36 : vector<16x1xi1> to vector<16x128xi1>
    %38 = vector.broadcast %cst_16 : f32 to vector<16x128xf32>
    %39 = arith.select %37, %38, %35 : vector<16x128xi1>, vector<16x128xf32>
    %40 = arith.truncf %39 : vector<16x128xf32> to vector<16x128xbf16>
    %c15_i32 = arith.constant 15 : i32
    %41 = vector.broadcast %c15_i32 : i32 to vector<16x1xi32>
    %42 = arith.cmpi sge, %32, %41 : vector<16x1xi32>
    %c15_i32_17 = arith.constant 15 : i32
    %43 = tpu.dynamic_rotate %15 by %c15_i32_17 dim 0 : vector<16x128xf32>, i32 -> vector<16x128xf32>
    %cst_18 = arith.constant 0.000000e+00 : f32
    %44 = vector.shape_cast %42 : vector<16x1xi1> to vector<16x1xi1>
    %45 = vector.broadcast %44 : vector<16x1xi1> to vector<16x128xi1>
    %46 = vector.broadcast %cst_18 : f32 to vector<16x128xf32>
    %47 = arith.select %45, %46, %43 : vector<16x128xi1>, vector<16x128xf32>
    %48 = arith.truncf %47 : vector<16x128xf32> to vector<16x128xbf16>
    %49 = arith.truncf %15 : vector<16x128xf32> to vector<16x128xbf16>
    %c0_19 = arith.constant 0 : index
    %c0_20 = arith.constant 0 : index
    %50 = vector.load %arg6[%c0_19, %c0_20] : memref<128x128xbf16, #tpu.memory_space<vmem>>, vector<128x128xbf16>
    %cst_21 = arith.constant dense<0.000000e+00> : vector<16x128xf32>
    %51 = tpu.matmul %40, %50, %cst_21 {dimension_numbers = #tpu.dot_dimension_numbers<[1], [0], [0], [1], [0, 0, 1, 1], [], []>} : vector<16x128xbf16>, vector<128x128xbf16>, vector<16x128xf32> -> vector<16x128xf32>
    %c0_22 = arith.constant 0 : index
    %c0_23 = arith.constant 0 : index
    %52 = vector.load %arg7[%c0_22, %c0_23] : memref<128x128xbf16, #tpu.memory_space<vmem>>, vector<128x128xbf16>
    %cst_24 = arith.constant dense<0.000000e+00> : vector<16x128xf32>
    %53 = tpu.matmul %49, %52, %cst_24 {dimension_numbers = #tpu.dot_dimension_numbers<[1], [0], [0], [1], [0, 0, 1, 1], [], []>} : vector<16x128xbf16>, vector<128x128xbf16>, vector<16x128xf32> -> vector<16x128xf32>
    %54 = arith.addf %51, %53 : vector<16x128xf32>
    %c0_25 = arith.constant 0 : index
    %c0_26 = arith.constant 0 : index
    %55 = vector.load %arg8[%c0_25, %c0_26] : memref<128x128xbf16, #tpu.memory_space<vmem>>, vector<128x128xbf16>
    %cst_27 = arith.constant dense<0.000000e+00> : vector<16x128xf32>
    %56 = tpu.matmul %48, %55, %cst_27 {dimension_numbers = #tpu.dot_dimension_numbers<[1], [0], [0], [1], [0, 0, 1, 1], [], []>} : vector<16x128xbf16>, vector<128x128xbf16>, vector<16x128xf32> -> vector<16x128xf32>
    %57 = arith.addf %54, %56 : vector<16x128xf32>
    %c0_28 = arith.constant 0 : index
    %c0_29 = arith.constant 0 : index
    %58 = vector.load %arg9[%c0_28, %c0_29] : memref<1x128xf32, #tpu.memory_space<vmem>>, vector<1x128xf32>
    %59 = vector.broadcast %58 : vector<1x128xf32> to vector<16x128xf32>
    %60 = arith.addf %57, %59 : vector<16x128xf32>
    %cst_30 = arith.constant 0.000000e+00 : f32
    %61 = vector.broadcast %cst_30 : f32 to vector<16x128xf32>
    %62 = arith.maximumf %60, %61 : vector<16x128xf32>
    %63 = arith.truncf %62 : vector<16x128xf32> to vector<16x128xbf16>
    %c0_31 = arith.constant 0 : index
    %c0_32 = arith.constant 0 : index
    %64 = vector.load %arg10[%c0_31, %c0_32] : memref<128x128xbf16, #tpu.memory_space<vmem>>, vector<128x128xbf16>
    %cst_33 = arith.constant dense<0.000000e+00> : vector<16x128xf32>
    %65 = tpu.matmul %63, %64, %cst_33 {dimension_numbers = #tpu.dot_dimension_numbers<[1], [0], [0], [1], [0, 0, 1, 1], [], []>} : vector<16x128xbf16>, vector<128x128xbf16>, vector<16x128xf32> -> vector<16x128xf32>
    %c0_34 = arith.constant 0 : index
    %c0_35 = arith.constant 0 : index
    %66 = vector.load %arg11[%c0_34, %c0_35] : memref<1x128xf32, #tpu.memory_space<vmem>>, vector<1x128xf32>
    %67 = vector.broadcast %66 : vector<1x128xf32> to vector<16x128xf32>
    %68 = arith.addf %65, %67 : vector<16x128xf32>
    %cst_36 = arith.constant 0.000000e+00 : f32
    %69 = vector.broadcast %cst_36 : f32 to vector<16x128xf32>
    %70 = arith.maximumf %68, %69 : vector<16x128xf32>
    %c0_37 = arith.constant 0 : index
    %c0_38 = arith.constant 0 : index
    %71 = vector.load %arg12[%c0_37, %c0_38] : memref<1x128xf32, #tpu.memory_space<vmem>>, vector<1x128xf32>
    %72 = vector.broadcast %71 : vector<1x128xf32> to vector<16x128xf32>
    %73 = arith.mulf %70, %72 : vector<16x128xf32>
    %c0_39 = arith.constant 0 : index
    %c0_40 = arith.constant 0 : index
    %74 = vector.load %arg13[%c0_39, %c0_40] : memref<1x128xf32, #tpu.memory_space<vmem>>, vector<1x128xf32>
    %75 = vector.broadcast %74 : vector<1x128xf32> to vector<16x128xf32>
    %76 = arith.addf %73, %75 : vector<16x128xf32>
    %77 = arith.addf %76, %1 : vector<16x128xf32>
    %78 = vector.shape_cast %77 : vector<16x128xf32> to vector<1x16x128xf32>
    %c0_41 = arith.constant 0 : index
    %c0_42 = arith.constant 0 : index
    %c0_43 = arith.constant 0 : index
    %79 = vector.load %arg14[%c0_41, %c0_42, %c0_43] : memref<1x16x128xf32, #tpu.memory_space<vmem>>, vector<1x16x128xf32>
    tpu.vector_store %arg14[%c0_41, %c0_42, %c0_43], %78 {strides = array<i32>} : memref<1x16x128xf32, #tpu.memory_space<vmem>>, vector<1x16x128xf32>,
    return
  }
  func.func @transform_0(%arg0: i32) -> (i32, i32, i32) {
    %c0_i32 = arith.constant 0 : i32
    %c0_i32_0 = arith.constant 0 : i32
    %c0_i32_1 = arith.constant 0 : i32
    return %arg0, %c0_i32, %c0_i32_0 : i32, i32, i32
  }
  func.func @transform_1(%arg0: i32) -> (i32, i32) {
    %c0_i32 = arith.constant 0 : i32
    %c0_i32_0 = arith.constant 0 : i32
    %c0_i32_1 = arith.constant 0 : i32
    return %c0_i32, %c0_i32_0 : i32, i32
  }
  func.func @transform_2(%arg0: i32) -> (i32, i32) {
    %c0_i32 = arith.constant 0 : i32
    %c0_i32_0 = arith.constant 0 : i32
    %c0_i32_1 = arith.constant 0 : i32
    return %c0_i32, %c0_i32_0 : i32, i32
  }
  func.func @transform_3(%arg0: i32) -> (i32, i32) {
    %c0_i32 = arith.constant 0 : i32
    %c0_i32_0 = arith.constant 0 : i32
    %c0_i32_1 = arith.constant 0 : i32
    return %c0_i32, %c0_i32_0 : i32, i32
  }
  func.func @transform_4(%arg0: i32) -> (i32, i32) {
    %c0_i32 = arith.constant 0 : i32
    %c0_i32_0 = arith.constant 0 : i32
    %c0_i32_1 = arith.constant 0 : i32
    return %c0_i32, %c0_i32_0 : i32, i32
  }
  func.func @transform_5(%arg0: i32) -> (i32, i32) {
    %c0_i32 = arith.constant 0 : i32
    %c0_i32_0 = arith.constant 0 : i32
    %c0_i32_1 = arith.constant 0 : i32
    return %c0_i32, %c0_i32_0 : i32, i32
  }
  func.func @transform_6(%arg0: i32) -> (i32, i32) {
    %c0_i32 = arith.constant 0 : i32
    %c0_i32_0 = arith.constant 0 : i32
    %c0_i32_1 = arith.constant 0 : i32
    return %c0_i32, %c0_i32_0 : i32, i32
  }
  func.func @transform_7(%arg0: i32) -> (i32, i32) {
    %c0_i32 = arith.constant 0 : i32
    %c0_i32_0 = arith.constant 0 : i32
    %c0_i32_1 = arith.constant 0 : i32
    return %c0_i32, %c0_i32_0 : i32, i32
  }
  func.func @transform_8(%arg0: i32) -> (i32, i32) {
    %c0_i32 = arith.constant 0 : i32
    %c0_i32_0 = arith.constant 0 : i32
    %c0_i32_1 = arith.constant 0 : i32
    return %c0_i32, %c0_i32_0 : i32, i32
  }
  func.func @transform_9(%arg0: i32) -> (i32, i32) {
    %c0_i32 = arith.constant 0 : i32
    %c0_i32_0 = arith.constant 0 : i32
    %c0_i32_1 = arith.constant 0 : i32
    return %c0_i32, %c0_i32_0 : i32, i32
  }
  func.func @transform_10(%arg0: i32) -> (i32, i32) {
    %c0_i32 = arith.constant 0 : i32
    %c0_i32_0 = arith.constant 0 : i32
    %c0_i32_1 = arith.constant 0 : i32
    return %c0_i32, %c0_i32_0 : i32, i32
  }
  func.func @transform_11(%arg0: i32) -> (i32, i32) {
    %c0_i32 = arith.constant 0 : i32
    %c0_i32_0 = arith.constant 0 : i32
    %c0_i32_1 = arith.constant 0 : i32
    return %c0_i32, %c0_i32_0 : i32, i32
  }
  func.func @transform_12(%arg0: i32) -> (i32, i32) {
    %c0_i32 = arith.constant 0 : i32
    %c0_i32_0 = arith.constant 0 : i32
    %c0_i32_1 = arith.constant 0 : i32
    return %c0_i32, %c0_i32_0 : i32, i32
  }
  func.func @transform_13(%arg0: i32) -> (i32, i32, i32) {
    %c0_i32 = arith.constant 0 : i32
    %c0_i32_0 = arith.constant 0 : i32
    %c0_i32_1 = arith.constant 0 : i32
    return %arg0, %c0_i32, %c0_i32_0 : i32, i32, i32
  }
}

</mosaic_0001>

<bundles_post_ra>
// kernel: tpu_custom_call.1
= control target key start
LH: loop header
LB: loop body
LE: loop exit
PB: predicated region body
PF: predicated region fallthrough
CT: control target
= control target key end

     0   :  { %s2437_s0 = inlined_call_operand.hbm [shape: f32[4,16,128], index: 0, kind: input, shape index: {}]   ;;  %s2438_s1 = inlined_call_operand.hbm [shape: bf16[128,128], index: 1, kind: input, shape index: {}]   ;;  %s2439_s2 = inlined_call_operand.vmem [shape: f32[1,128], index: 2, kind: input, shape index: {}]   ;;  %s2440_s3 = inlined_call_operand.vmem [shape: f32[1,128], index: 3, kind: input, shape index: {}]   ;;  %s2441_s4 = inlined_call_operand.vmem [shape: f32[1,128], index: 4, kind: input, shape index: {}]   ;;  %s2442_s5 = inlined_call_operand.hbm [shape: bf16[128,128], index: 5, kind: input, shape index: {}]   ;;  %s2443_s6 = inlined_call_operand.hbm [shape: bf16[128,128], index: 6, kind: input, shape index: {}]   ;;  %s2444_s7 = inlined_call_operand.hbm [shape: bf16[128,128], index: 7, kind: input, shape index: {}]   ;;  %s2445_s8 = inlined_call_operand.vmem [shape: f32[1,128], index: 8, kind: input, shape index: {}]   ;;  %s2446_s9 = inlined_call_operand.hbm [shape: bf16[128,128], index: 9, kind: input, shape index: {}]   ;;  %s2447_s10 = inlined_call_operand.vmem [shape: f32[1,128], index: 10, kind: input, shape index: {}]   ;;  %s2448_s11 = inlined_call_operand.vmem [shape: f32[1,128], index: 11, kind: input, shape index: {}]   ;;  %s2449_s12 = inlined_call_operand.vmem [shape: f32[1,128], index: 12, kind: input, shape index: {}]   ;;  %s2450_s13 = inlined_call_operand.hbm [shape: f32[4,16,128], index: 13, kind: output, shape index: {}]  }
   0x1   :  { %2455 = sst [smem:[#allocation19_spill]] %s2438_s1 }
   0x2   :  { %2456 = sst [smem:[#allocation20_spill]] %s2445_s8 }
   0x3   :  { %2457 = sst [smem:[#allocation21_spill]] %s2447_s10 }
   0x4   :  { %2458 = sst [smem:[#allocation22_spill]] %s2448_s11 }
   0x5   :  { %2459 = sst [smem:[#allocation23_spill]] %s2449_s12 }
   0x6   :  { %2460 = sst [smem:[#allocation24_spill]] %s2450_s13 }
   0x7   :  { %18 = vsyncpa [#allocation3], 0 }
   0x8   :  { %20 = vsyncpa [#allocation3 + $0x1], 0 }
   0x9   :  { %21 = vsyncpa [#allocation6], 0 }
   0xa   :  { %22 = vsyncpa [#allocation9], 0 }
   0xb   :  { %23 = vsyncpa [#allocation12], 0 }
   0xc   :  { %24 = vsyncpa [#allocation4], 0 }
   0xd   :  { %26 = vsyncpa [#allocation4 + $0x1], 0  ;;  %s2034_s25 = smov 0   ;;  %s2036_s26 = smov 0  }
   0xe   :  { %s2038_s27 = smov 0   ;;  %s2040_s28 = smov 0  }
   0xf LB: > { %s1948_s29 = smov [#allocation5]   ;;  %s2055_s14 = sadd.s32 4294967295, %s1946_s28   ;;  %s1946_s28 = sphi %s2040_s28, %s2487_s28   ;;  %s1942_s27 = sphi %s2038_s27, %s2486_s27   ;;  %s1938_s26 = sphi %s2036_s26, %s2485_s26   ;;  %s1934_s25 = sphi %s2034_s25, %s2484_s25  }
  0x10   : > { %s353_s30 = sshll.u32 %s1948_s29, 4  ;;  %p1325_p0 = scmp.ge.s32.totalorder %s1946_s28, 1  ;;  %s2060_s30 = int_to_ptr.vmem [resolvable:$true] %s353_s30 }
  0x11   : > { %p2452_p1 = scmp.eq.s32.totalorder %s2055_s14, 0  ;;  %p341_p2 = scmp.lt.s32.totalorder %s1946_s28, 5 }
  0x12   : > { %s1949_s16 = smov [#allocation8]   ;;  %s1950_s19 = smov [#allocation7]  }
  0x13   : > { %p2062_p3 = pnand %p1325_p0, %p341_p2  ;;  %s388_s17 = sshll.u32 %s1949_s16, 4  ;;  %s2074_s17 = int_to_ptr.vmem [resolvable:$true] %s388_s17 }
  0x14   : > { %s375_s20 = sshll.u32 %s1950_s19, 4  ;;  %s2463_s1 = sld [smem:[#allocation19_spill]]  ;;  %s2076_s20 = int_to_ptr.vmem [resolvable:$true] %s375_s20 }
  0x15   : > { %s2461_s15 = scalar_select %p2062_p3, 1, 0 }
  0x16   : > { %p1576_p4 = pneg %p2062_p3 }
  0x18   : > { %p2070_p5 = pnand %p1576_p4, %p2452_p1 }
  0x1a   : > { %s1698_s23 = scalar_lea.hbm %s2463_s1, 1024  ;;  %p2086_p7 = pneg %p2070_p5 }
  0x1b   : > { %p1699_p6 = scmp.ne.s32.totalorder %s2463_s1, %s1698_s23  ;;  %p1705_p10 = scmp.lt.u32.totalorder %s1698_s23, %s2463_s1 }
  0x1d   : > { %p1701_p8 = pnand %p2086_p7, %p1699_p6 }
  0x1f   : > { %p1702_p9 = pneg %p1701_p8 }
  0x21   : > { %p1707_p11 = pnand %p1705_p10, %p1702_p9 }
  0x23   : > { %1710 = shalt.err (!%p1707_p11)
}
  0x24   : > { %s1711_s21 = scalar_lea.vmem %s2060_s30, 1024  ;;  %p1719_p2 = scmp.lt.s32.totalorder %s2060_s30, %s2060_s30 }
  0x25   : > { %p1712_p12 = scmp.ne.s32.totalorder %s2060_s30, %s1711_s21  ;;  %p1720_p4 = scmp.lt.s32.totalorder %s1711_s21, %s1711_s21 }
  0x27   : > { %p1714_p13 = pnand %p1712_p12, %p2086_p7  ;;  %p1721_p6 = por %p1720_p4, %p1719_p2 }
  0x29   : > { %p1715_p0 = pneg %p1714_p13 }
  0x2b   : > { %p1722_p8 = pnand %p1721_p6, %p1715_p0 }
  0x2d   : > { %1725 = shalt.err (!%p1722_p8)
}
  0x2e   : > { %s1951_s22 = smov 64   ;;  %s1952_s13 = smov 4  }
  0x2f   : > { %1579 = dma.hbm_to_vmem [thread:$0]  (!%p2070_p5), %s2463_s1, 1024, %s2060_s30, [#allocation6], %s1951_s22, %s1951_s22, %s1952_s13  }
  0x30   : > { %s1726_s21 = scalar_lea.hbm %s2443_s6, 1024 }
  0x31   : > { %p1727_p9 = scmp.ne.s32.totalorder %s2443_s6, %s1726_s21  ;;  %p1733_p12 = scmp.lt.u32.totalorder %s1726_s21, %s2443_s6 }
  0x33   : > { %p1729_p10 = pnand %p1727_p9, %p2086_p7 }
  0x35   : > { %p1730_p11 = pneg %p1729_p10 }
  0x37   : > { %p1735_p13 = pnand %p1733_p12, %p1730_p11 }
  0x39   : > { %1738 = shalt.err (!%p1735_p13)
}
  0x3a   : > { %s1739_s30 = scalar_lea.vmem %s2074_s17, 1024  ;;  %p1747_p6 = scmp.lt.s32.totalorder %s2074_s17, %s2074_s17 }
  0x3b   : > { %p1740_p0 = scmp.ne.s32.totalorder %s2074_s17, %s1739_s30  ;;  %p1748_p8 = scmp.lt.s32.totalorder %s1739_s30, %s1739_s30 }
  0x3d   : > { %p1742_p2 = pnand %p1740_p0, %p2086_p7  ;;  %p1749_p9 = por %p1748_p8, %p1747_p6 }
  0x3f   : > { %p1743_p4 = pneg %p1742_p2 }
  0x41   : > { %p1750_p10 = pnand %p1749_p9, %p1743_p4 }
  0x43   : > { %1753 = shalt.err (!%p1750_p10)
}
  0x44   : > { %1585 = dma.hbm_to_vmem [thread:$0]  (!%p2070_p5), %s2443_s6, 1024, %s2074_s17, [#allocation9], %s1951_s22, %s1951_s22, %s1952_s13  }
  0x45   : > { %s1754_s23 = scalar_lea.hbm %s2442_s5, 1024 }
  0x46   : > { %p1755_p11 = scmp.ne.s32.totalorder %s2442_s5, %s1754_s23  ;;  %p1761_p0 = scmp.lt.u32.totalorder %s1754_s23, %s2442_s5 }
  0x48   : > { %p1757_p12 = pnand %p1755_p11, %p2086_p7 }
  0x4a   : > { %p1758_p13 = pneg %p1757_p12 }
  0x4c   : > { %p1763_p2 = pnand %p1761_p0, %p1758_p13 }
  0x4e   : > { %1766 = shalt.err (!%p1763_p2)
}
  0x4f   : > { %s1767_s17 = scalar_lea.vmem %s2076_s20, 1024  ;;  %p1775_p9 = scmp.lt.s32.totalorder %s2076_s20, %s2076_s20 }
  0x50   : > { %p1768_p4 = scmp.ne.s32.totalorder %s2076_s20, %s1767_s17  ;;  %p1776_p10 = scmp.lt.s32.totalorder %s1767_s17, %s1767_s17 }
  0x52   : > { %p1770_p6 = pnand %p1768_p4, %p2086_p7  ;;  %p1777_p11 = por %p1776_p10, %p1775_p9 }
  0x54   : > { %p1771_p8 = pneg %p1770_p6 }
  0x56   : > { %p1778_p12 = pnand %p1777_p11, %p1771_p8 }
  0x58   : > { %1781 = shalt.err (!%p1778_p12)
}
  0x59   : > { %1582 = dma.hbm_to_vmem [thread:$0]  (!%p2070_p5), %s2442_s5, 1024, %s2076_s20, [#allocation6], %s1951_s22, %s1951_s22, %s1952_s13  }
  0x5a   : > { %s1953_s10 = smov [#allocation10]   ;;  %s1954_s12 = smov [#allocation11]  }
  0x5b   : > { %s401_s11 = sshll.u32 %s1953_s10, 4  ;;  %s417_s23 = sshll.u32 %s1954_s12, 4  ;;  %s402_s11 = int_to_ptr.vmem [resolvable:$true] %s401_s11  ;;  %s418_s23 = int_to_ptr.vmem [resolvable:$true] %s417_s23 }
  0x5c   : > { %s1782_s19 = scalar_lea.hbm %s2444_s7, 1024 }
  0x5d   : > { %p1783_p13 = scmp.ne.s32.totalorder %s2444_s7, %s1782_s19  ;;  %p1789_p4 = scmp.lt.u32.totalorder %s1782_s19, %s2444_s7 }
  0x5f   : > { %p1785_p0 = pnand %p1783_p13, %p2086_p7 }
  0x61   : > { %p1786_p2 = pneg %p1785_p0 }
  0x63   : > { %p1791_p6 = pnand %p1789_p4, %p1786_p2 }
  0x65   : > { %1794 = shalt.err (!%p1791_p6)
}
  0x66   : > { %s1795_s20 = scalar_lea.vmem %s402_s11, 1024  ;;  %p1803_p11 = scmp.lt.s32.totalorder %s402_s11, %s402_s11 }
  0x67   : > { %p1796_p8 = scmp.ne.s32.totalorder %s402_s11, %s1795_s20  ;;  %p1804_p12 = scmp.lt.s32.totalorder %s1795_s20, %s1795_s20 }
  0x69   : > { %p1798_p9 = pnand %p1796_p8, %p2086_p7  ;;  %p1805_p1 = por %p1804_p12, %p1803_p11 }
  0x6b   : > { %p1799_p10 = pneg %p1798_p9 }
  0x6d   : > { %p1806_p3 = pnand %p1805_p1, %p1799_p10 }
  0x6f   : > { %1809 = shalt.err (!%p1806_p3)
}
  0x70   : > { %1588 = dma.hbm_to_vmem [thread:$0]  (!%p2070_p5), %s2444_s7, 1024, %s402_s11, [#allocation9], %s1951_s22, %s1951_s22, %s1952_s13  }
  0x71   : > { %s1810_s24 = scalar_lea.hbm %s2446_s9, 1024 }
  0x72   : > { %p1811_p1 = scmp.ne.s32.totalorder %s2446_s9, %s1810_s24  ;;  %p1817_p0 = scmp.lt.u32.totalorder %s1810_s24, %s2446_s9 }
  0x74   : > { %p1813_p3 = pnand %p1811_p1, %p2086_p7 }
  0x76   : > { %p1814_p13 = pneg %p1813_p3 }
  0x78   : > { %p1819_p2 = pnand %p1817_p0, %p1814_p13 }
  0x7a   : > { %1822 = shalt.err (!%p1819_p2)
}
  0x7b   : > { %s1823_s30 = scalar_lea.vmem %s418_s23, 1024  ;;  %p1831_p9 = scmp.lt.s32.totalorder %s418_s23, %s418_s23 }
  0x7c   : > { %p1824_p4 = scmp.ne.s32.totalorder %s418_s23, %s1823_s30  ;;  %p1832_p10 = scmp.lt.s32.totalorder %s1823_s30, %s1823_s30 }
  0x7e   : > { %p1826_p6 = pnand %p1824_p4, %p2086_p7  ;;  %p1833_p11 = por %p1832_p10, %p1831_p9 }
  0x80   : > { %p1827_p8 = pneg %p1826_p6 }
  0x82   : > { %p1834_p12 = pnand %p1833_p11, %p1827_p8 }
  0x84   : > { %1837 = shalt.err (!%p1834_p12)
}
  0x85   : > { %1591 = dma.hbm_to_vmem [thread:$0]  (!%p2070_p5), %s2446_s9, 1024, %s418_s23, [#allocation12], %s1951_s22, %s1951_s22, %s1952_s13  }
  0x86   : > { %s1324_s18 = sadd.s32 4294967294, %s1946_s28   ;;  %s2206_s16 = sadd.s32 1, %s1946_s28  }
  0x87   : > { %s39_s1 = sadd.s32 1, %s1942_s27  ;;  %s36_s8 = ssub.s32 %s1946_s28, %s2206_s16 }
  0x88   : > { %p46_p7 = scmp.ne.s32.totalorder %s1942_s27, %s1938_s26  ;;  %p37_p1 = scmp.eq.s32.totalorder %s36_s8, 0 }
  0x89   : > { %p47_p3 = scmp.eq.s32.totalorder %s1946_s28, 0  ;;  %p52_p13 = scmp.ne.s32.totalorder %s1938_s26, %s1934_s25 }
  0x8a   : > { %p328_p0 = scmp.eq.s32.totalorder %s2055_s14, 3  ;;  %p2465_p4 = scmp.eq.s32.totalorder %s2055_s14, 0 }
  0x8b   : > { %s2218_s10 = scalar_select %p37_p1, %s1942_s27, %s39_s1  }
  0x8c   : > { %p48_p2 = por %p47_p3, %p46_p7  ;;  %p2222_p6 = por %p2465_p4, %p52_p13 }
  0x8d   : > { %p2226_p5 = por %p328_p0, %p46_p7  ;;  %p334_p8 = scmp.eq.s32.totalorder %s1324_s18, 3 }
  0x8e   : > { %p1605_p9 = scmp.lt.s32.totalorder %s1946_s28, 4  ;;  %s440_s13 = sand.u32 1, %s1942_s27  }
  0x8f   : > { %s2467_s22 = scalar_select %p2226_p5, 1, 0 }
  0x90   : > { %p2232_p10 = por %p334_p8, %p52_p13  ;;  %s1332_s24 = sshll.u32 %s440_s13, 4 }
  0x91   : > { %s1403_s29 = sshll.u32 %s1946_s28, 8  ;;  %s444_s30 = scalar_lea.vmem [#allocation2], %s1332_s24 }
  0x92   : > { %s2468_s23 = scalar_select %p2232_p10, 1, 0 }
  0x93   : > { %s2240_s17 = scalar_lea.hbm %s2437_s0, %s1403_s29  ;;  %s451_s11 = sshll.u32 %s444_s30, 4  ;;  %s2246_s11 = int_to_ptr.vmem [resolvable:$true] %s451_s11 }
  0x94   : > { %p2242_p11 = pnand %p1605_p9, %p48_p2  ;;  %s2248_s18 = scalar_lea.sflag [#allocation3], %s440_s13 }
  0x95   : > { %s1838_s1 = scalar_lea.hbm %s2240_s17, 256  ;;  %s1843_s29 = scalar_lea.hbm %s2437_s0, 1024 }
  0x96   : > { %p1839_p12 = scmp.ne.s32.totalorder %s2240_s17, %s1838_s1  ;;  %p1840_p7 = pneg %p2242_p11 }
  0x97   : > { %p1844_p13 = scmp.lt.u32.totalorder %s2240_s17, %s2437_s0  ;;  %p1845_p0 = scmp.lt.u32.totalorder %s1843_s29, %s1838_s1 }
  0x98   : > { %p1841_p1 = pnand %p1840_p7, %p1839_p12  ;;  %p1847_p4 = scmp.lt.u32.totalorder %s1838_s1, %s2240_s17 }
  0x99   : > { %p1846_p2 = por %p1845_p0, %p1844_p13 }
  0x9a   : > { %p1842_p3 = pneg %p1841_p1 }
  0x9b   : > { %p1848_p8 = por %p1847_p4, %p1846_p2 }
  0x9d   : > { %p1849_p9 = pnand %p1848_p8, %p1842_p3 }
  0x9f   : > { %1852 = shalt.err (!%p1849_p9)
}
  0xa0   : > { %s1853_s13 = scalar_lea.vmem %s2246_s11, 256  ;;  %s1955_s30 = smov [#allocation2]  }
  0xa1   : > { %p1854_p12 = scmp.ne.s32.totalorder %s2246_s11, %s1853_s13  ;;  %s1858_s8 = sshll.u32 %s1955_s30, 4  ;;  %s1859_s8 = int_to_ptr.vmem [resolvable:$false] %s1858_s8 }
  0xa2   : > { %s1860_s24 = scalar_lea.vmem %s1859_s8, 512  ;;  %p1861_p5 = scmp.lt.s32.totalorder %s2246_s11, %s1859_s8 }
  0xa3   : > { %p1856_p1 = pnand %p1854_p12, %p1840_p7  ;;  %p1862_p13 = scmp.lt.s32.totalorder %s1860_s24, %s1853_s13 }
  0xa5   : > { %p1857_p10 = pneg %p1856_p1  ;;  %p1863_p0 = por %p1862_p13, %p1861_p5 }
  0xa7   : > { %p1864_p2 = pnand %p1863_p0, %p1857_p10 }
  0xa9   : > { %1867 = shalt.err (!%p1864_p2)
}
  0xaa   : > { %s1956_s1 = smov 128   ;;  %s1957_s29 = smov 8  }
  0xab   : > { %1595 = dma.hbm_to_vmem [thread:$0]  (!%p2242_p11), %s2240_s17, 256, %s2246_s11, %s2248_s18, %s1956_s1, %s1956_s1, %s1957_s29  }
  0xac   : > { %p2470_p7 = scmp.ne.s32.totalorder %s2461_s15, 0 }
  0xad   : > { %s2279_s19 = sand.u32 (!%p2470_p7), 1, %s1938_s26  }
  0xae   : > { %463 = sbr.rel (%p2470_p7) target bundleno = 943 (0x3af), region = 72  ;;  %s1336_s21 = sshll.u32 (!%p2470_p7), %s2279_s19, 4 }
  0xaf   : > { %s466_s13 = scalar_lea.sflag (!%p2470_p7), [#allocation3], %s2279_s19  ;;  %s2285_s30 = scalar_lea.vmem (!%p2470_p7), [#allocation2], %s1336_s21 }
  0xb5   : > { %1913 = dma.done.wait (%p2222_p6), %s466_s13, 256  }
  0xb6   : > { %1915 = vsyncadd (%p2222_p6), %s466_s13, 4294967040  ;;  %p2471_p5 = scmp.eq.s32.totalorder %s2055_s14, 0 }
  0xb8   : > { %1917 = dma.done.wait (%p2471_p5), [#allocation6], 2048   ;;  %p2472_p10 = pmov %p2471_p5 }
  0xb9   : > { %p2473_p11 = pmov %p2471_p5 }
  0xba   : > { %1919 = vsyncadd (%p2472_p10), [#allocation6], 4294965248 }
  0xbb   : > { %1921 = dma.done.wait (%p2473_p11), [#allocation9], 2048   ;;  %p2474_p3 = pmov %p2471_p5 }
  0xbd   : > { %1923 = vsyncadd (%p2474_p3), [#allocation9], 4294965248  ;;  %p2475_p4 = pmov %p2474_p3 }
  0xbe   : > { %p2476_p8 = pmov %p2474_p3 }
  0xbf   : > { %1925 = dma.done.wait (%p2475_p4), [#allocation12], 1024  }
  0xc0   : > { %1927 = vsyncadd (%p2476_p8), [#allocation12], 4294966272  ;;  %v1958_v0 = vmov 0.0   ;;  %vm1959_vm0 = vmmov 0   ;;  %v1658_v1 = vld [vmem:[#allocation5] sm:$0xff]   ;;  %v1659_v2 = vld [vmem:[#allocation5 + $0x8] sm:$0xff]   ;;  %v668_v29 = vlaneseq }
  0xc1   : > { %1452 = vmatprep.subr.bf16.mxu0 %v1958_v0  ;;  %1468 = vmatprep.mubr.msk.bf16.mxu0 %vm1959_vm0, %v1958_v0  ;;  %v1660_v3 = vld [vmem:[#allocation5 + $0x10] sm:$0xff]   ;;  %v1666_v4 = vld [vmem:[#allocation8] sm:$0xff]   ;;  %v1661_v5 = vld [vmem:[#allocation5 + $0x18] sm:$0xff]   ;;  %vm1960_vm4 = vmmov 1   ;;  %s2477_s1 = sld [smem:[#allocation20_spill]]  ;;  %s2479_s17 = sld [smem:[#allocation22_spill]] }
  0xc2   : > { %1472 = vmatprep.subr.bf16.mxu1 %v1958_v0  ;;  %1488 = vmatprep.mubr.msk.bf16.mxu1 %vm1959_vm0, %v1958_v0  ;;  %v1667_v6 = vld [vmem:[#allocation8 + $0x8] sm:$0xff]   ;;  %v1662_v7 = vld [vmem:[#allocation5 + $0x20] sm:$0xff]   ;;  %v1669_v8 = vld [vmem:[#allocation8 + $0x10] sm:$0xff]   ;;  %v669_v35 = vshrl.u32 %v668_v29, 7  ;;  %s2480_s18 = sld [smem:[#allocation23_spill]]  ;;  %s1404_s8 = sshll.u32 %s2055_s14, 8 }
  0xc3   : > { %1453 = vmatpush3.bf16.msra.mxu0 %v1658_v1  ;;  %1473 = vmatpush3.bf16.msra.mxu1 %v1666_v4  ;;  %v1663_v9 = vld [vmem:[#allocation5 + $0x28] sm:$0xff]   ;;  %v1671_v10 = vld [vmem:[#allocation8 + $0x18] sm:$0xff]   ;;  %v1664_v11 = vld [vmem:[#allocation5 + $0x30] sm:$0xff]   ;;  %s531_s24 = scalar_lea.vmem [#allocation13], %s1336_s21  ;;  %s1190_s14 = scalar_lea.sflag [#allocation4], %s2279_s19 }
  0xc4   : > { %1454 = vmatprep.subr.bf16.mxu0 %v1958_v0  ;;  %1474 = vmatprep.subr.bf16.mxu1 %v1958_v0  ;;  %v1673_v12 = vld [vmem:[#allocation8 + $0x20] sm:$0xff]   ;;  %v1665_v13 = vld [vmem:[#allocation5 + $0x38] sm:$0xff]   ;;  %v1670_v18 = vld [vmem:[#allocation7 + $0x8] sm:$0xff]   ;;  %v675_v42 = vand.u32 15, %v669_v35  ;;  %vm699_vm1 = vcmp.lt.s32.totalorder %v669_v35, 1  ;;  %vm713_vm3 = vcmp.lt.s32.totalorder %v669_v35, 7 }
  0xc5   : > { %v2319_v14 = vld [vmem:[%s2285_s30] sm:$0xff]  ;;  %v2322_v15 = vld [vmem:[%s2285_s30 + $0x8] sm:$0xff]  ;;  %v670_v63 = vadd.s32 8, %v669_v35  ;;  %s2478_s30 = sld [smem:[#allocation21_spill]]  ;;  %p2482_p9 = scmp.ne.s32.totalorder %s2467_s22, 0 }
  0xc6   : > { %v1668_v16 = vld [vmem:[#allocation7] sm:$0xff]   ;;  %v535_v17 = vpack.c.bf16 %v2322_v15, %v2319_v14  ;;  %v1672_v19 = vld [vmem:[#allocation7 + $0x10] sm:$0xff]   ;;  %v1674_v20 = vld [vmem:[#allocation7 + $0x18] sm:$0xff]   ;;  %vm1405_vm2 = vcmp.ne.s32.totalorder %v675_v42, 0  ;;  %s1961_s12 = smov [#allocation13]  }
  0xc7   : > { %1455 = vmatpush3.bf16.msra.mxu0 %v1659_v2  ;;  %1475 = vmatpush3.bf16.msra.mxu1 %v1667_v6  ;;  %v1675_v21 = vld [vmem:[#allocation8 + $0x28] sm:$0xff]   ;;  %v1676_v22 = vld [vmem:[#allocation7 + $0x20] sm:$0xff]   ;;  %v1677_v23 = vld [vmem:[#allocation8 + $0x30] sm:$0xff]   ;;  %v682_v2 = vand.u32 15, %v670_v63 }
  0xc8   : > { %1456 = vmatprep.subr.bf16.mxu0 %v1958_v0  ;;  %1476 = vmatprep.subr.bf16.mxu1 %v1958_v0  ;;  %v1678_v24 = vld [vmem:[#allocation7 + $0x28] sm:$0xff]   ;;  %v1679_v25 = vld [vmem:[#allocation8 + $0x38] sm:$0xff]   ;;  %v1680_v26 = vld [vmem:[#allocation7 + $0x30] sm:$0xff]  }
  0xc9   : > { %v1681_v27 = vld [vmem:[#allocation7 + $0x38] sm:$0xff]   ;;  %v1343_v28 = vld [vmem:[%s2439_s2] ss:$0 sm:$0xff]  ;;  %vm1371_vm5 = vmpackc.low %vm1960_vm4, %vm1405_vm2  ;;  %vm1406_vm6 = vcmp.lt.s32.totalorder %v682_v2, 15 }
  0xca   : > { %v1352_v33 = vld [vmem:[%s2440_s3] ss:$0 sm:$0xff]  ;;  %v1683_v57 = vld [vmem:[#allocation10 + $0x8] sm:$0xff]   ;;  %v1684_v59 = vld [vmem:[#allocation10 + $0x10] sm:$0xff]  }
  0xcb   : > { %1457 = vmatpush3.bf16.msra.mxu0 %v1660_v3  ;;  %1477 = vmatpush3.bf16.msra.mxu1 %v1669_v8  ;;  %v1353_v39 = vld [vmem:[%s2441_s4] ss:$0 sm:$0xff]  ;;  %v1685_v60 = vld [vmem:[#allocation10 + $0x18] sm:$0xff]   ;;  %v1687_v62 = vld [vmem:[#allocation10 + $0x28] sm:$0xff]  }
  0xcc   : > { %1458 = vmatprep.subr.bf16.mxu0 %v1958_v0  ;;  %1478 = vmatprep.subr.bf16.mxu1 %v1958_v0  ;;  %v1682_v47 = vld [vmem:[#allocation10] sm:$0xff]   ;;  %v1688_v1 = vld [vmem:[#allocation10 + $0x30] sm:$0xff]   ;;  %v1689_v3 = vld [vmem:[#allocation10 + $0x38] sm:$0xff]  }
  0xcd   : > { %v1686_v61 = vld [vmem:[#allocation10 + $0x20] sm:$0xff]   ;;  %vm1383_vm7 = vmpackc.low %vm1406_vm6, %vm1960_vm4  ;;  %v1692_v6 = vld [vmem:[#allocation11 + $0x10] sm:$0xff]  }
  0xce   : > { %v1690_v4 = vld [vmem:[#allocation11] sm:$0xff]  }
  0xcf   : > { %1459 = vmatpush3.bf16.msra.mxu0 %v1661_v5  ;;  %1479 = vmatpush3.bf16.msra.mxu1 %v1671_v10  ;;  %v1691_v5 = vld [vmem:[#allocation11 + $0x8] sm:$0xff]   ;;  %v1694_v8 = vld [vmem:[#allocation11 + $0x20] sm:$0xff]   ;;  %v1696_v10 = vld [vmem:[#allocation11 + $0x30] sm:$0xff]  }
  0xd0   : > { %1460 = vmatprep.subr.bf16.mxu0 %v1958_v0  ;;  %1480 = vmatprep.subr.bf16.mxu1 %v1958_v0  ;;  %v1387_v35 = vld [vmem:[%s2478_s30] ss:$0 sm:$0xff]  ;;  %s2481_s30 = sld [smem:[#allocation24_spill]] }
  0xd3   : > { %1461 = vmatpush3.bf16.msra.mxu0 %v1662_v7  ;;  %1481 = vmatpush3.bf16.msra.mxu1 %v1673_v12  ;;  %v1693_v7 = vld [vmem:[#allocation11 + $0x18] sm:$0xff]  }
  0xd4   : > { %1462 = vmatprep.subr.bf16.mxu0 %v1958_v0  ;;  %1482 = vmatprep.subr.bf16.mxu1 %v1958_v0 }
  0xd6   : > { %s2391_s15 = scalar_lea.hbm %s2481_s30, %s1404_s8 }
  0xd7   : > { %1463 = vmatpush3.bf16.msra.mxu0 %v1663_v9  ;;  %1483 = vmatpush3.bf16.msra.mxu1 %v1675_v21  ;;  %v1695_v9 = vld [vmem:[#allocation11 + $0x28] sm:$0xff]  }
  0xd8   : > { %1464 = vmatprep.subr.bf16.mxu0 %v1958_v0  ;;  %1484 = vmatprep.subr.bf16.mxu1 %v1958_v0 }
  0xdb   : > { %1465 = vmatpush3.bf16.msra.mxu0 %v1664_v11  ;;  %1485 = vmatpush3.bf16.msra.mxu1 %v1677_v23  ;;  %v1697_v11 = vld [vmem:[#allocation11 + $0x38] sm:$0xff]  }
  0xdc   : > { %1466 = vmatprep.subr.bf16.mxu0 %v1958_v0  ;;  %1486 = vmatprep.subr.bf16.mxu1 %v1958_v0 }
  0xdf   : > { %1467 = vmatpush3.bf16.msra.mxu0 %v1665_v13  ;;  %1487 = vmatpush3.bf16.msra.mxu1 %v1679_v25  ;;  %v1386_v25 = vld [vmem:[%s2477_s1] ss:$0 sm:$0xff]  ;;  %s1203_s1 = sshll.u32 %s531_s24, 4  ;;  %s2393_s1 = int_to_ptr.vmem [resolvable:$true] %s1203_s1 }
  0xe0   : > { %1492 = vmatprep.subr.bf16.mxu0 %v1958_v0  ;;  %1512 = vmatprep.subr.bf16.mxu1 %v1958_v0  ;;  %s1868_s21 = scalar_lea.vmem %s2393_s1, 256 }
  0xe1   : > { %p1869_p6 = scmp.ne.s32.totalorder %s2393_s1, %s1868_s21 }
  0xe2   : > { %1469 = vmatmul.mubr.bf16.vlgmr.msra.gmra.mrb[0].mxu0 %v535_v17 }
  0xe3   : > { %1493 = vmatpush3.bf16.msra.mxu0 %v1668_v16  ;;  %1508 = vmatprep.mubr.msk.bf16.mxu0 %vm1959_vm0, %v1958_v0  ;;  %p1870_p12 = pnand %p1869_p6, %p2482_p9 }
  0xe4   : > { %1494 = vmatprep.subr.bf16.mxu0 %v1958_v0 }
  0xe5   : > { %p1871_p1 = pneg %p1870_p12 }
  0xe7   : > { %1495 = vmatpush3.bf16.msra.mxu0 %v1670_v18 }
  0xe8   : > { %1496 = vmatprep.subr.bf16.mxu0 %v1958_v0 }
  0xeb   : > { %1497 = vmatpush3.bf16.msra.mxu0 %v1672_v19 }
  0xec   : > { %1498 = vmatprep.subr.bf16.mxu0 %v1958_v0 }
  0xef   : > { %1499 = vmatpush3.bf16.msra.mxu0 %v1674_v20 }
  0xf0   : > { %1500 = vmatprep.subr.bf16.mxu0 %v1958_v0 }
  0xf3   : > { %1501 = vmatpush3.bf16.msra.mxu0 %v1676_v22 }
  0xf4   : > { %1502 = vmatprep.subr.bf16.mxu0 %v1958_v0 }
  0xf7   : > { %1503 = vmatpush3.bf16.msra.mxu0 %v1678_v24 }
  0xf8   : > { %1504 = vmatprep.subr.bf16.mxu0 %v1958_v0 }
  0xfb   : > { %1505 = vmatpush3.bf16.msra.mxu0 %v1680_v26 }
  0xfc   : > { %1506 = vmatprep.subr.bf16.mxu0 %v1958_v0 }
  0xff   : > { %1507 = vmatpush3.bf16.msra.mxu0 %v1681_v27 }
 0x100   : > { %1532 = vmatprep.subr.bf16.mxu0 %v1958_v0 }
 0x1b5   : > { %v641_v30 = vpop.f32.mrb[0].mxu0 }
 0x1b6   : > { %v642_v31 = vadd.f32 %v1343_v28, %v641_v30  ;;  %v1470_v32 = vpop.f32.mrb[1].mxu0 }
 0x1b7   : > { %v644_v34 = vpop.f32.mrb[2].mxu0 }
 0x1b8   : > { %v648_v36 = vmax.f32 %v642_v31, 0.0  ;;  %v645_v37 = vadd.f32 %v1343_v28, %v644_v34  ;;  %v1471_v38 = vpop.f32.mrb[3].mxu0 }
 0x1ba   : > { %v657_v40 = vmul.f32 %v1352_v33, %v648_v36  ;;  %v649_v41 = vmax.f32 %v645_v37, 0.0 }
 0x1bc   : > { %v666_v43 = vadd.f32 %v1353_v39, %v657_v40  ;;  %v658_v44 = vmul.f32 %v1352_v33, %v649_v41 }
 0x1be   : > { %v667_v45 = vadd.f32 %v1353_v39, %v658_v44  ;;  %v697_v46 = vrot.slane %v666_v43, 7  ;;  %v711_v48 = vrot.slane %v666_v43, 1  ;;  %v1396_v39 = vld [vmem:[%s2479_s17] ss:$0 sm:$0xff]  ;;  %s1872_s17 = sshll.u32 %s1961_s12, 4  ;;  %s1873_s17 = int_to_ptr.vmem [resolvable:$false] %s1872_s17 }
 0x1bf   : > { %v1397_v44 = vld [vmem:[%s2480_s18] ss:$0 sm:$0xff]  ;;  %s1874_s11 = scalar_lea.vmem %s1873_s17, 512  ;;  %p1875_p13 = scmp.lt.s32.totalorder %s2393_s1, %s1873_s17 }
 0x1c0   : > { %v698_v49 = vrot.slane %v667_v45, 7  ;;  %v712_v50 = vrot.slane %v667_v45, 1  ;;  %v723_v51 = vpack.c.bf16 %v667_v45, %v666_v43  ;;  %p1876_p0 = scmp.lt.s32.totalorder %s1874_s11, %s1868_s21 }
 0x1c2   : > { %1489 = vmatmul.mubr.bf16.vlgmr.msra.gmra.mrb[0].mxu1 %v723_v51  ;;  %v700_v52 = vsel %vm699_vm1, %v697_v46, %v698_v49  ;;  %v701_v53 = vsel %vm699_vm1, %v698_v49, %v697_v46  ;;  %v714_v54 = vsel %vm713_vm3, %v711_v48, %v712_v50  ;;  %v715_v55 = vsel %vm713_vm3, %v712_v50, %v711_v48  ;;  %p1877_p2 = por %p1876_p0, %p1875_p13 }
 0x1c3   : > { %1513 = vmatpush3.bf16.msra.mxu1 %v1682_v47  ;;  %v1372_v56 = vpack.c.bf16 %v700_v52, %v701_v53  ;;  %1528 = vmatprep.mubr.msk.bf16.mxu1 %vm1959_vm0, %v1958_v0  ;;  %v1384_v58 = vpack.c.bf16 %v715_v55, %v714_v54 }
 0x1c4   : > { %1514 = vmatprep.subr.bf16.mxu1 %v1958_v0  ;;  %p1878_p7 = pnand %p1877_p2, %p1871_p1 }
 0x1c5   : > { %1509 = vmatmul.mubr.msk.bf16.vlgmr.msra.gmra.mrb[4].mxu0 %vm1371_vm5, %v1372_v56 }
 0x1c6   : > { %1548 = vmatprep.mubr.msk.bf16.mxu0 %vm1959_vm0, %v1958_v0  ;;  %1533 = vmatpush3.bf16.msra.mxu0 %v1690_v4 }
 0x1c7   : > { %1515 = vmatpush3.bf16.msra.mxu1 %v1683_v57  ;;  %1534 = vmatprep.subr.bf16.mxu0 %v1958_v0 }
 0x1c8   : > { %1516 = vmatprep.subr.bf16.mxu1 %v1958_v0 }
 0x1ca   : > { %1535 = vmatpush3.bf16.msra.mxu0 %v1691_v5 }
 0x1cb   : > { %1517 = vmatpush3.bf16.msra.mxu1 %v1684_v59  ;;  %1536 = vmatprep.subr.bf16.mxu0 %v1958_v0 }
 0x1cc   : > { %1518 = vmatprep.subr.bf16.mxu1 %v1958_v0 }
 0x1ce   : > { %1537 = vmatpush3.bf16.msra.mxu0 %v1692_v6 }
 0x1cf   : > { %1519 = vmatpush3.bf16.msra.mxu1 %v1685_v60  ;;  %1538 = vmatprep.subr.bf16.mxu0 %v1958_v0 }
 0x1d0   : > { %1520 = vmatprep.subr.bf16.mxu1 %v1958_v0 }
 0x1d2   : > { %1539 = vmatpush3.bf16.msra.mxu0 %v1693_v7 }
 0x1d3   : > { %1521 = vmatpush3.bf16.msra.mxu1 %v1686_v61  ;;  %1540 = vmatprep.subr.bf16.mxu0 %v1958_v0 }
 0x1d4   : > { %1522 = vmatprep.subr.bf16.mxu1 %v1958_v0 }
 0x1d6   : > { %1541 = vmatpush3.bf16.msra.mxu0 %v1694_v8 }
 0x1d7   : > { %1523 = vmatpush3.bf16.msra.mxu1 %v1687_v62  ;;  %1542 = vmatprep.subr.bf16.mxu0 %v1958_v0 }
 0x1d8   : > { %1524 = vmatprep.subr.bf16.mxu1 %v1958_v0 }
 0x1da   : > { %1543 = vmatpush3.bf16.msra.mxu0 %v1695_v9 }
 0x1db   : > { %1525 = vmatpush3.bf16.msra.mxu1 %v1688_v1  ;;  %1544 = vmatprep.subr.bf16.mxu0 %v1958_v0 }
 0x1dc   : > { %1526 = vmatprep.subr.bf16.mxu1 %v1958_v0 }
 0x1de   : > { %1545 = vmatpush3.bf16.msra.mxu0 %v1696_v10 }
 0x1df   : > { %1527 = vmatpush3.bf16.msra.mxu1 %v1689_v3  ;;  %1546 = vmatprep.subr.bf16.mxu0 %v1958_v0 }
 0x1e2   : > { %1529 = vmatmul.mubr.msk.bf16.vlgmr.msra.gmra.mrb[4].mxu1 %vm1383_vm7, %v1384_v58  ;;  %1547 = vmatpush3.bf16.msra.mxu0 %v1697_v11 }
 0x295   : > { %v838_v12 = vpop.f32.mrb[0].mxu1 }
 0x296   : > { %v1490_v13 = vpop.f32.mrb[1].mxu1 }
 0x297   : > { %v841_v16 = vpop.f32.mrb[2].mxu1 }
 0x298   : > { %v1491_v17 = vpop.f32.mrb[3].mxu1  ;;  %v927_v18 = vpop.f32.mrb[4].mxu0 }
 0x299   : > { %v928_v19 = vadd.f32 %v927_v18, %v838_v12  ;;  %v1510_v20 = vpop.f32.mrb[5].mxu0 }
 0x29a   : > { %v930_v21 = vpop.f32.mrb[6].mxu0 }
 0x29b   : > { %v931_v22 = vadd.f32 %v930_v21, %v841_v16  ;;  %v1511_v23 = vpop.f32.mrb[7].mxu0 }
 0x2b5   : > { %v1032_v24 = vpop.f32.mrb[4].mxu1 }
 0x2b6   : > { %v1039_v26 = vadd.f32 %v1032_v24, %v928_v19  ;;  %v1530_v27 = vpop.f32.mrb[5].mxu1 }
 0x2b7   : > { %v1035_v0 = vpop.f32.mrb[6].mxu1 }
 0x2b8   : > { %v1048_v28 = vadd.f32 %v1386_v25, %v1039_v26  ;;  %v1040_v29 = vadd.f32 %v1035_v0, %v931_v22  ;;  %v1531_v30 = vpop.f32.mrb[7].mxu1 }
 0x2ba   : > { %v1049_v31 = vadd.f32 %v1386_v25, %v1040_v29  ;;  %v1050_v32 = vmax.f32 %v1048_v28, 0.0 }
 0x2bc   : > { %v1051_v33 = vmax.f32 %v1049_v31, 0.0 }
 0x2be   : > { %v1052_v34 = vpack.c.bf16 %v1051_v33, %v1050_v32 }
 0x2c0   : > { %1549 = vmatmul.mubr.bf16.vlgmr.msra.gmra.mrb[8].mxu0 %v1052_v34 }
 0x393   : > { %v1158_v36 = vpop.f32.mrb[8].mxu0 }
 0x394   : > { %v1159_v37 = vadd.f32 %v1387_v35, %v1158_v36  ;;  %v1550_v38 = vpop.f32.mrb[9].mxu0 }
 0x395   : > { %v1161_v40 = vpop.f32.mrb[10].mxu0 }
 0x396   : > { %v1165_v41 = vmax.f32 %v1159_v37, 0.0  ;;  %v1162_v42 = vadd.f32 %v1387_v35, %v1161_v40  ;;  %v1551_v43 = vpop.f32.mrb[11].mxu0 }
 0x398   : > { %v1174_v45 = vmul.f32 %v1396_v39, %v1165_v41  ;;  %v1166_v46 = vmax.f32 %v1162_v42, 0.0 }
 0x39a   : > { %v1183_v47 = vadd.f32 %v1397_v44, %v1174_v45  ;;  %v1175_v48 = vmul.f32 %v1396_v39, %v1166_v46 }
 0x39c   : > { %v1185_v49 = vadd.f32 %v1183_v47, %v2319_v14  ;;  %v1184_v50 = vadd.f32 %v1397_v44, %v1175_v48 }
 0x39e   : > { %1187 = vst [vmem:[%s531_s24] sm:$0xff] %v1185_v49  ;;  %v1186_v51 = vadd.f32 %v1184_v50, %v2322_v15 }
 0x3a0   : > { %1188 = vst [vmem:[%s531_s24 + $0x8] sm:$0xff] %v1186_v51 }
 0x3a1   : > { %1881 = shalt.err (!%p1878_p7)
}
 0x3a2   : > { %s1882_s20 = scalar_lea.hbm %s2391_s15, 256  ;;  %s1886_s24 = scalar_lea.hbm %s2481_s30, 1024 }
 0x3a3   : > { %p1883_p5 = scmp.ne.s32.totalorder %s2391_s15, %s1882_s20  ;;  %p1887_p3 = scmp.lt.u32.totalorder %s2391_s15, %s2481_s30 }
 0x3a4   : > { %p1888_p4 = scmp.lt.u32.totalorder %s1886_s24, %s1882_s20  ;;  %p1890_p6 = scmp.lt.u32.totalorder %s1882_s20, %s2391_s15 }
 0x3a5   : > { %p1884_p10 = pnand %p1883_p5, %p2482_p9 }
 0x3a6   : > { %p1889_p8 = por %p1888_p4, %p1887_p3 }
 0x3a7   : > { %p1885_p11 = pneg %p1884_p10 }
 0x3a8   : > { %p1891_p12 = por %p1890_p6, %p1889_p8 }
 0x3aa   : > { %p1892_p1 = pnand %p1891_p12, %p1885_p11 }
 0x3ac   : > { %1895 = shalt.err (!%p1892_p1)
}
 0x3ad   : > { %s1962_s21 = smov 128   ;;  %s1963_s12 = smov 8  }
 0x3ae   : > { %1574 = dma.vmem_to_hbm [thread:$0]  (%p2482_p9), %s2393_s1, 256, %s2391_s15, %s1190_s14, %s1962_s21, %s1962_s21, %s1963_s12  }
 0x3af PF: > { %p1611_p13 = scmp.ge.s32.totalorder %s1946_s28, 2  ;;  %s1218_s17 = sand.u32 1, %s1934_s25  }
 0x3b0   : > { %p2483_p0 = scmp.ne.s32.totalorder %s2468_s23, 0  ;;  %s1219_s11 = scalar_lea.sflag [#allocation4], %s1218_s17 }
 0x3b2   : > { %p1597_p2 = pnand %p1611_p13, %p2483_p0 }
 0x3b4   : > { %1929 = dma.done.wait (!%p1597_p2), %s1219_s11, 256  }
 0x3b5   : > { %1931 = vsyncadd (!%p1597_p2), %s1219_s11, 4294967040  ;;  %p29_p7 = scmp.ge.s32.totalorder %s2206_s16, 6   ;;  %s2484_s25 = smov %s1938_s26 }
 0x3b6   : > { %s2485_s26 = smov %s1942_s27  ;;  %s2486_s27 = smov %s2218_s10 }
 0x3b7   : > { %s2487_s28 = smov %s2206_s16  ;;  %31 = sbr.rel (!%p29_p7) target bundleno = 15 (0xf), region = 137 }
 0x3be   :  { %1224 = vsyncpa [#allocation3], 1 }
 0x3bf   :  { %1226 = vsyncpa [#allocation3 + $0x1], 1 }
 0x3c0   :  { %1227 = vsyncpa [#allocation6], 1 }
 0x3c1   :  { %1228 = vsyncpa [#allocation9], 1 }
 0x3c2   :  { %1229 = vsyncpa [#allocation12], 1 }
 0x3c3   :  { %1230 = vsyncpa [#allocation4], 1 }
 0x3c4   :  { %1232 = vsyncpa [#allocation4 + $0x1], 1 }

// kernel: tpu_custom_call.1
= control target key start
LH: loop header
LB: loop body
LE: loop exit
PB: predicated region body
PF: predicated region fallthrough
CT: control target
= control target key end

     0   :  { %s2437_s0 = inlined_call_operand.hbm [shape: f32[4,16,128], index: 0, kind: input, shape index: {}]   ;;  %s2438_s1 = inlined_call_operand.hbm [shape: bf16[128,128], index: 1, kind: input, shape index: {}]   ;;  %s2439_s2 = inlined_call_operand.vmem [shape: f32[1,128], index: 2, kind: input, shape index: {}]   ;;  %s2440_s3 = inlined_call_operand.vmem [shape: f32[1,128], index: 3, kind: input, shape index: {}]   ;;  %s2441_s4 = inlined_call_operand.vmem [shape: f32[1,128], index: 4, kind: input, shape index: {}]   ;;  %s2442_s5 = inlined_call_operand.hbm [shape: bf16[128,128], index: 5, kind: input, shape index: {}]   ;;  %s2443_s6 = inlined_call_operand.hbm [shape: bf16[128,128], index: 6, kind: input, shape index: {}]   ;;  %s2444_s7 = inlined_call_operand.hbm [shape: bf16[128,128], index: 7, kind: input, shape index: {}]   ;;  %s2445_s8 = inlined_call_operand.vmem [shape: f32[1,128], index: 8, kind: input, shape index: {}]   ;;  %s2446_s9 = inlined_call_operand.hbm [shape: bf16[128,128], index: 9, kind: input, shape index: {}]   ;;  %s2447_s10 = inlined_call_operand.vmem [shape: f32[1,128], index: 10, kind: input, shape index: {}]   ;;  %s2448_s11 = inlined_call_operand.vmem [shape: f32[1,128], index: 11, kind: input, shape index: {}]   ;;  %s2449_s12 = inlined_call_operand.vmem [shape: f32[1,128], index: 12, kind: input, shape index: {}]   ;;  %s2450_s13 = inlined_call_operand.hbm [shape: f32[4,16,128], index: 13, kind: output, shape index: {}]  }
   0x1   :  { %2455 = sst [smem:[#allocation19_spill]] %s2438_s1 }
   0x2   :  { %2456 = sst [smem:[#allocation20_spill]] %s2445_s8 }
   0x3   :  { %2457 = sst [smem:[#allocation21_spill]] %s2447_s10 }
   0x4   :  { %2458 = sst [smem:[#allocation22_spill]] %s2448_s11 }
   0x5   :  { %2459 = sst [smem:[#allocation23_spill]] %s2449_s12 }
   0x6   :  { %2460 = sst [smem:[#allocation24_spill]] %s2450_s13 }
   0x7   :  { %18 = vsyncpa [#allocation3], 0 }
   0x8   :  { %20 = vsyncpa [#allocation3 + $0x1], 0 }
   0x9   :  { %21 = vsyncpa [#allocation6], 0 }
   0xa   :  { %22 = vsyncpa [#allocation9], 0 }
   0xb   :  { %23 = vsyncpa [#allocation12], 0 }
   0xc   :  { %24 = vsyncpa [#allocation4], 0 }
   0xd   :  { %26 = vsyncpa [#allocation4 + $0x1], 0  ;;  %s2034_s25 = smov 0   ;;  %s2036_s26 = smov 0  }
   0xe   :  { %s2038_s27 = smov 0   ;;  %s2040_s28 = smov 0  }
   0xf LB: > { %s1948_s29 = smov [#allocation5]   ;;  %s2055_s14 = sadd.s32 4294967295, %s1946_s28   ;;  %s1946_s28 = sphi %s2040_s28, %s2487_s28   ;;  %s1942_s27 = sphi %s2038_s27, %s2486_s27   ;;  %s1938_s26 = sphi %s2036_s26, %s2485_s26   ;;  %s1934_s25 = sphi %s2034_s25, %s2484_s25  }
  0x10   : > { %s353_s30 = sshll.u32 %s1948_s29, 4  ;;  %p1325_p0 = scmp.ge.s32.totalorder %s1946_s28, 1  ;;  %s2060_s30 = int_to_ptr.vmem [resolvable:$true] %s353_s30 }
  0x11   : > { %p2452_p1 = scmp.eq.s32.totalorder %s2055_s14, 0  ;;  %p341_p2 = scmp.lt.s32.totalorder %s1946_s28, 5 }
  0x12   : > { %s1949_s16 = smov [#allocation8]   ;;  %s1950_s19 = smov [#allocation7]  }
  0x13   : > { %p2062_p3 = pnand %p1325_p0, %p341_p2  ;;  %s388_s17 = sshll.u32 %s1949_s16, 4  ;;  %s2074_s17 = int_to_ptr.vmem [resolvable:$true] %s388_s17 }
  0x14   : > { %s375_s20 = sshll.u32 %s1950_s19, 4  ;;  %s2463_s1 = sld [smem:[#allocation19_spill]]  ;;  %s2076_s20 = int_to_ptr.vmem [resolvable:$true] %s375_s20 }
  0x15   : > { %s2461_s15 = scalar_select %p2062_p3, 1, 0 }
  0x16   : > { %p1576_p4 = pneg %p2062_p3 }
  0x18   : > { %p2070_p5 = pnand %p1576_p4, %p2452_p1 }
  0x1a   : > { %s1698_s23 = scalar_lea.hbm %s2463_s1, 1024  ;;  %p2086_p7 = pneg %p2070_p5 }
  0x1b   : > { %p1699_p6 = scmp.ne.s32.totalorder %s2463_s1, %s1698_s23  ;;  %p1705_p10 = scmp.lt.u32.totalorder %s1698_s23, %s2463_s1 }
  0x1d   : > { %p1701_p8 = pnand %p2086_p7, %p1699_p6 }
  0x1f   : > { %p1702_p9 = pneg %p1701_p8 }
  0x21   : > { %p1707_p11 = pnand %p1705_p10, %p1702_p9 }
  0x23   : > { %1710 = shalt.err (!%p1707_p11)
}
  0x24   : > { %s1711_s21 = scalar_lea.vmem %s2060_s30, 1024  ;;  %p1719_p2 = scmp.lt.s32.totalorder %s2060_s30, %s2060_s30 }
  0x25   : > { %p1712_p12 = scmp.ne.s32.totalorder %s2060_s30, %s1711_s21  ;;  %p1720_p4 = scmp.lt.s32.totalorder %s1711_s21, %s1711_s21 }
  0x27   : > { %p1714_p13 = pnand %p1712_p12, %p2086_p7  ;;  %p1721_p6 = por %p1720_p4, %p1719_p2 }
  0x29   : > { %p1715_p0 = pneg %p1714_p13 }
  0x2b   : > { %p1722_p8 = pnand %p1721_p6, %p1715_p0 }
  0x2d   : > { %1725 = shalt.err (!%p1722_p8)
}
  0x2e   : > { %s1951_s22 = smov 64   ;;  %s1952_s13 = smov 4  }
  0x2f   : > { %1579 = dma.hbm_to_vmem [thread:$0]  (!%p2070_p5), %s2463_s1, 1024, %s2060_s30, [#allocation6], %s1951_s22, %s1951_s22, %s1952_s13  }
  0x30   : > { %s1726_s21 = scalar_lea.hbm %s2443_s6, 1024 }
  0x31   : > { %p1727_p9 = scmp.ne.s32.totalorder %s2443_s6, %s1726_s21  ;;  %p1733_p12 = scmp.lt.u32.totalorder %s1726_s21, %s2443_s6 }
  0x33   : > { %p1729_p10 = pnand %p1727_p9, %p2086_p7 }
  0x35   : > { %p1730_p11 = pneg %p1729_p10 }
  0x37   : > { %p1735_p13 = pnand %p1733_p12, %p1730_p11 }
  0x39   : > { %1738 = shalt.err (!%p1735_p13)
}
  0x3a   : > { %s1739_s30 = scalar_lea.vmem %s2074_s17, 1024  ;;  %p1747_p6 = scmp.lt.s32.totalorder %s2074_s17, %s2074_s17 }
  0x3b   : > { %p1740_p0 = scmp.ne.s32.totalorder %s2074_s17, %s1739_s30  ;;  %p1748_p8 = scmp.lt.s32.totalorder %s1739_s30, %s1739_s30 }
  0x3d   : > { %p1742_p2 = pnand %p1740_p0, %p2086_p7  ;;  %p1749_p9 = por %p1748_p8, %p1747_p6 }
  0x3f   : > { %p1743_p4 = pneg %p1742_p2 }
  0x41   : > { %p1750_p10 = pnand %p1749_p9, %p1743_p4 }
  0x43   : > { %1753 = shalt.err (!%p1750_p10)
}
  0x44   : > { %1585 = dma.hbm_to_vmem [thread:$0]  (!%p2070_p5), %s2443_s6, 1024, %s2074_s17, [#allocation9], %s1951_s22, %s1951_s22, %s1952_s13  }
  0x45   : > { %s1754_s23 = scalar_lea.hbm %s2442_s5, 1024 }
  0x46   : > { %p1755_p11 = scmp.ne.s32.totalorder %s2442_s5, %s1754_s23  ;;  %p1761_p0 = scmp.lt.u32.totalorder %s1754_s23, %s2442_s5 }
  0x48   : > { %p1757_p12 = pnand %p1755_p11, %p2086_p7 }
  0x4a   : > { %p1758_p13 = pneg %p1757_p12 }
  0x4c   : > { %p1763_p2 = pnand %p1761_p0, %p1758_p13 }
  0x4e   : > { %1766 = shalt.err (!%p1763_p2)
}
  0x4f   : > { %s1767_s17 = scalar_lea.vmem %s2076_s20, 1024  ;;  %p1775_p9 = scmp.lt.s32.totalorder %s2076_s20, %s2076_s20 }
  0x50   : > { %p1768_p4 = scmp.ne.s32.totalorder %s2076_s20, %s1767_s17  ;;  %p1776_p10 = scmp.lt.s32.totalorder %s1767_s17, %s1767_s17 }
  0x52   : > { %p1770_p6 = pnand %p1768_p4, %p2086_p7  ;;  %p1777_p11 = por %p1776_p10, %p1775_p9 }
  0x54   : > { %p1771_p8 = pneg %p1770_p6 }
  0x56   : > { %p1778_p12 = pnand %p1777_p11, %p1771_p8 }
  0x58   : > { %1781 = shalt.err (!%p1778_p12)
}
  0x59   : > { %1582 = dma.hbm_to_vmem [thread:$0]  (!%p2070_p5), %s2442_s5, 1024, %s2076_s20, [#allocation6], %s1951_s22, %s1951_s22, %s1952_s13  }
  0x5a   : > { %s1953_s10 = smov [#allocation10]   ;;  %s1954_s12 = smov [#allocation11]  }
  0x5b   : > { %s401_s11 = sshll.u32 %s1953_s10, 4  ;;  %s417_s23 = sshll.u32 %s1954_s12, 4  ;;  %s402_s11 = int_to_ptr.vmem [resolvable:$true] %s401_s11  ;;  %s418_s23 = int_to_ptr.vmem [resolvable:$true] %s417_s23 }
  0x5c   : > { %s1782_s19 = scalar_lea.hbm %s2444_s7, 1024 }
  0x5d   : > { %p1783_p13 = scmp.ne.s32.totalorder %s2444_s7, %s1782_s19  ;;  %p1789_p4 = scmp.lt.u32.totalorder %s1782_s19, %s2444_s7 }
  0x5f   : > { %p1785_p0 = pnand %p1783_p13, %p2086_p7 }
  0x61   : > { %p1786_p2 = pneg %p1785_p0 }
  0x63   : > { %p1791_p6 = pnand %p1789_p4, %p1786_p2 }
  0x65   : > { %1794 = shalt.err (!%p1791_p6)
}
  0x66   : > { %s1795_s20 = scalar_lea.vmem %s402_s11, 1024  ;;  %p1803_p11 = scmp.lt.s32.totalorder %s402_s11, %s402_s11 }
  0x67   : > { %p1796_p8 = scmp.ne.s32.totalorder %s402_s11, %s1795_s20  ;;  %p1804_p12 = scmp.lt.s32.totalorder %s1795_s20, %s1795_s20 }
  0x69   : > { %p1798_p9 = pnand %p1796_p8, %p2086_p7  ;;  %p1805_p1 = por %p1804_p12, %p1803_p11 }
  0x6b   : > { %p1799_p10 = pneg %p1798_p9 }
  0x6d   : > { %p1806_p3 = pnand %p1805_p1, %p1799_p10 }
  0x6f   : > { %1809 = shalt.err (!%p1806_p3)
}
  0x70   : > { %1588 = dma.hbm_to_vmem [thread:$0]  (!%p2070_p5), %s2444_s7, 1024, %s402_s11, [#allocation9], %s1951_s22, %s1951_s22, %s1952_s13  }
  0x71   : > { %s1810_s24 = scalar_lea.hbm %s2446_s9, 1024 }
  0x72   : > { %p1811_p1 = scmp.ne.s32.totalorder %s2446_s9, %s1810_s24  ;;  %p1817_p0 = scmp.lt.u32.totalorder %s1810_s24, %s2446_s9 }
  0x74   : > { %p1813_p3 = pnand %p1811_p1, %p2086_p7 }
  0x76   : > { %p1814_p13 = pneg %p1813_p3 }
  0x78   : > { %p1819_p2 = pnand %p1817_p0, %p1814_p13 }
  0x7a   : > { %1822 = shalt.err (!%p1819_p2)
}
  0x7b   : > { %s1823_s30 = scalar_lea.vmem %s418_s23, 1024  ;;  %p1831_p9 = scmp.lt.s32.totalorder %s418_s23, %s418_s23 }
  0x7c   : > { %p1824_p4 = scmp.ne.s32.totalorder %s418_s23, %s1823_s30  ;;  %p1832_p10 = scmp.lt.s32.totalorder %s1823_s30, %s1823_s30 }
  0x7e   : > { %p1826_p6 = pnand %p1824_p4, %p2086_p7  ;;  %p1833_p11 = por %p1832_p10, %p1831_p9 }
  0x80   : > { %p1827_p8 = pneg %p1826_p6 }
  0x82   : > { %p1834_p12 = pnand %p1833_p11, %p1827_p8 }
  0x84   : > { %1837 = shalt.err (!%p1834_p12)
}
  0x85   : > { %1591 = dma.hbm_to_vmem [thread:$0]  (!%p2070_p5), %s2446_s9, 1024, %s418_s23, [#allocation12], %s1951_s22, %s1951_s22, %s1952_s13  }
  0x86   : > { %s1324_s18 = sadd.s32 4294967294, %s1946_s28   ;;  %s2206_s16 = sadd.s32 1, %s1946_s28  }
  0x87   : > { %s39_s1 = sadd.s32 1, %s1942_s27  ;;  %s36_s8 = ssub.s32 %s1946_s28, %s2206_s16 }
  0x88   : > { %p46_p7 = scmp.ne.s32.totalorder %s1942_s27, %s1938_s26  ;;  %p37_p1 = scmp.eq.s32.totalorder %s36_s8, 0 }
  0x89   : > { %p47_p3 = scmp.eq.s32.totalorder %s1946_s28, 0  ;;  %p52_p13 = scmp.ne.s32.totalorder %s1938_s26, %s1934_s25 }
  0x8a   : > { %p328_p0 = scmp.eq.s32.totalorder %s2055_s14, 3  ;;  %p2465_p4 = scmp.eq.s32.totalorder %s2055_s14, 0 }
  0x8b   : > { %s2218_s10 = scalar_select %p37_p1, %s1942_s27, %s39_s1  }
  0x8c   : > { %p48_p2 = por %p47_p3, %p46_p7  ;;  %p2222_p6 = por %p2465_p4, %p52_p13 }
  0x8d   : > { %p2226_p5 = por %p328_p0, %p46_p7  ;;  %p334_p8 = scmp.eq.s32.totalorder %s1324_s18, 3 }
  0x8e   : > { %p1605_p9 = scmp.lt.s32.totalorder %s1946_s28, 4  ;;  %s440_s13 = sand.u32 1, %s1942_s27  }
  0x8f   : > { %s2467_s22 = scalar_select %p2226_p5, 1, 0 }
  0x90   : > { %p2232_p10 = por %p334_p8, %p52_p13  ;;  %s1332_s24 = sshll.u32 %s440_s13, 4 }
  0x91   : > { %s1403_s29 = sshll.u32 %s1946_s28, 8  ;;  %s444_s30 = scalar_lea.vmem [#allocation2], %s1332_s24 }
  0x92   : > { %s2468_s23 = scalar_select %p2232_p10, 1, 0 }
  0x93   : > { %s2240_s17 = scalar_lea.hbm %s2437_s0, %s1403_s29  ;;  %s451_s11 = sshll.u32 %s444_s30, 4  ;;  %s2246_s11 = int_to_ptr.vmem [resolvable:$true] %s451_s11 }
  0x94   : > { %p2242_p11 = pnand %p1605_p9, %p48_p2  ;;  %s2248_s18 = scalar_lea.sflag [#allocation3], %s440_s13 }
  0x95   : > { %s1838_s1 = scalar_lea.hbm %s2240_s17, 256  ;;  %s1843_s29 = scalar_lea.hbm %s2437_s0, 1024 }
  0x96   : > { %p1839_p12 = scmp.ne.s32.totalorder %s2240_s17, %s1838_s1  ;;  %p1840_p7 = pneg %p2242_p11 }
  0x97   : > { %p1844_p13 = scmp.lt.u32.totalorder %s2240_s17, %s2437_s0  ;;  %p1845_p0 = scmp.lt.u32.totalorder %s1843_s29, %s1838_s1 }
  0x98   : > { %p1841_p1 = pnand %p1840_p7, %p1839_p12  ;;  %p1847_p4 = scmp.lt.u32.totalorder %s1838_s1, %s2240_s17 }
  0x99   : > { %p1846_p2 = por %p1845_p0, %p1844_p13 }
  0x9a   : > { %p1842_p3 = pneg %p1841_p1 }
  0x9b   : > { %p1848_p8 = por %p1847_p4, %p1846_p2 }
  0x9d   : > { %p1849_p9 = pnand %p1848_p8, %p1842_p3 }
  0x9f   : > { %1852 = shalt.err (!%p1849_p9)
}
  0xa0   : > { %s1853_s13 = scalar_lea.vmem %s2246_s11, 256  ;;  %s1955_s30 = smov [#allocation2]  }
  0xa1   : > { %p1854_p12 = scmp.ne.s32.totalorder %s2246_s11, %s1853_s13  ;;  %s1858_s8 = sshll.u32 %s1955_s30, 4  ;;  %s1859_s8 = int_to_ptr.vmem [resolvable:$false] %s1858_s8 }
  0xa2   : > { %s1860_s24 = scalar_lea.vmem %s1859_s8, 512  ;;  %p1861_p5 = scmp.lt.s32.totalorder %s2246_s11, %s1859_s8 }
  0xa3   : > { %p1856_p1 = pnand %p1854_p12, %p1840_p7  ;;  %p1862_p13 = scmp.lt.s32.totalorder %s1860_s24, %s1853_s13 }
  0xa5   : > { %p1857_p10 = pneg %p1856_p1  ;;  %p1863_p0 = por %p1862_p13, %p1861_p5 }
  0xa7   : > { %p1864_p2 = pnand %p1863_p0, %p1857_p10 }
  0xa9   : > { %1867 = shalt.err (!%p1864_p2)
}
  0xaa   : > { %s1956_s1 = smov 128   ;;  %s1957_s29 = smov 8  }
  0xab   : > { %1595 = dma.hbm_to_vmem [thread:$0]  (!%p2242_p11), %s2240_s17, 256, %s2246_s11, %s2248_s18, %s1956_s1, %s1956_s1, %s1957_s29  }
  0xac   : > { %p2470_p7 = scmp.ne.s32.totalorder %s2461_s15, 0 }
  0xad   : > { %s2279_s19 = sand.u32 (!%p2470_p7), 1, %s1938_s26  }
  0xae   : > { %463 = sbr.rel (%p2470_p7) target bundleno = 943 (0x3af), region = 72  ;;  %s1336_s21 = sshll.u32 (!%p2470_p7), %s2279_s19, 4 }
  0xaf   : > { %s466_s13 = scalar_lea.sflag (!%p2470_p7), [#allocation3], %s2279_s19  ;;  %s2285_s30 = scalar_lea.vmem (!%p2470_p7), [#allocation2], %s1336_s21 }
  0xb5   : > { %1913 = dma.done.wait (%p2222_p6), %s466_s13, 256  }
  0xb6   : > { %1915 = vsyncadd (%p2222_p6), %s466_s13, 4294967040  ;;  %p2471_p5 = scmp.eq.s32.totalorder %s2055_s14, 0 }
  0xb8   : > { %1917 = dma.done.wait (%p2471_p5), [#allocation6], 2048   ;;  %p2472_p10 = pmov %p2471_p5 }
  0xb9   : > { %p2473_p11 = pmov %p2471_p5 }
  0xba   : > { %1919 = vsyncadd (%p2472_p10), [#allocation6], 4294965248 }
  0xbb   : > { %1921 = dma.done.wait (%p2473_p11), [#allocation9], 2048   ;;  %p2474_p3 = pmov %p2471_p5 }
  0xbd   : > { %1923 = vsyncadd (%p2474_p3), [#allocation9], 4294965248  ;;  %p2475_p4 = pmov %p2474_p3 }
  0xbe   : > { %p2476_p8 = pmov %p2474_p3 }
  0xbf   : > { %1925 = dma.done.wait (%p2475_p4), [#allocation12], 1024  }
  0xc0   : > { %1927 = vsyncadd (%p2476_p8), [#allocation12], 4294966272  ;;  %v1958_v0 = vmov 0.0   ;;  %vm1959_vm0 = vmmov 0   ;;  %v1658_v1 = vld [vmem:[#allocation5] sm:$0xff]   ;;  %v1659_v2 = vld [vmem:[#allocation5 + $0x8] sm:$0xff]   ;;  %v668_v29 = vlaneseq }
  0xc1   : > { %1452 = vmatprep.subr.bf16.mxu0 %v1958_v0  ;;  %1468 = vmatprep.mubr.msk.bf16.mxu0 %vm1959_vm0, %v1958_v0  ;;  %v1660_v3 = vld [vmem:[#allocation5 + $0x10] sm:$0xff]   ;;  %v1666_v4 = vld [vmem:[#allocation8] sm:$0xff]   ;;  %v1661_v5 = vld [vmem:[#allocation5 + $0x18] sm:$0xff]   ;;  %vm1960_vm4 = vmmov 1   ;;  %s2477_s1 = sld [smem:[#allocation20_spill]]  ;;  %s2479_s17 = sld [smem:[#allocation22_spill]] }
  0xc2   : > { %1472 = vmatprep.subr.bf16.mxu1 %v1958_v0  ;;  %1488 = vmatprep.mubr.msk.bf16.mxu1 %vm1959_vm0, %v1958_v0  ;;  %v1667_v6 = vld [vmem:[#allocation8 + $0x8] sm:$0xff]   ;;  %v1662_v7 = vld [vmem:[#allocation5 + $0x20] sm:$0xff]   ;;  %v1669_v8 = vld [vmem:[#allocation8 + $0x10] sm:$0xff]   ;;  %v669_v35 = vshrl.u32 %v668_v29, 7  ;;  %s2480_s18 = sld [smem:[#allocation23_spill]]  ;;  %s1404_s8 = sshll.u32 %s2055_s14, 8 }
  0xc3   : > { %1453 = vmatpush3.bf16.msra.mxu0 %v1658_v1  ;;  %1473 = vmatpush3.bf16.msra.mxu1 %v1666_v4  ;;  %v1663_v9 = vld [vmem:[#allocation5 + $0x28] sm:$0xff]   ;;  %v1671_v10 = vld [vmem:[#allocation8 + $0x18] sm:$0xff]   ;;  %v1664_v11 = vld [vmem:[#allocation5 + $0x30] sm:$0xff]   ;;  %s531_s24 = scalar_lea.vmem [#allocation13], %s1336_s21  ;;  %s1190_s14 = scalar_lea.sflag [#allocation4], %s2279_s19 }
  0xc4   : > { %1454 = vmatprep.subr.bf16.mxu0 %v1958_v0  ;;  %1474 = vmatprep.subr.bf16.mxu1 %v1958_v0  ;;  %v1673_v12 = vld [vmem:[#allocation8 + $0x20] sm:$0xff]   ;;  %v1665_v13 = vld [vmem:[#allocation5 + $0x38] sm:$0xff]   ;;  %v1670_v18 = vld [vmem:[#allocation7 + $0x8] sm:$0xff]   ;;  %v675_v42 = vand.u32 15, %v669_v35  ;;  %vm699_vm1 = vcmp.lt.s32.totalorder %v669_v35, 1  ;;  %vm713_vm3 = vcmp.lt.s32.totalorder %v669_v35, 7 }
  0xc5   : > { %v2319_v14 = vld [vmem:[%s2285_s30] sm:$0xff]  ;;  %v2322_v15 = vld [vmem:[%s2285_s30 + $0x8] sm:$0xff]  ;;  %v670_v63 = vadd.s32 8, %v669_v35  ;;  %s2478_s30 = sld [smem:[#allocation21_spill]]  ;;  %p2482_p9 = scmp.ne.s32.totalorder %s2467_s22, 0 }
  0xc6   : > { %v1668_v16 = vld [vmem:[#allocation7] sm:$0xff]   ;;  %v535_v17 = vpack.c.bf16 %v2322_v15, %v2319_v14  ;;  %v1672_v19 = vld [vmem:[#allocation7 + $0x10] sm:$0xff]   ;;  %v1674_v20 = vld [vmem:[#allocation7 + $0x18] sm:$0xff]   ;;  %vm1405_vm2 = vcmp.ne.s32.totalorder %v675_v42, 0  ;;  %s1961_s12 = smov [#allocation13]  }
  0xc7   : > { %1455 = vmatpush3.bf16.msra.mxu0 %v1659_v2  ;;  %1475 = vmatpush3.bf16.msra.mxu1 %v1667_v6  ;;  %v1675_v21 = vld [vmem:[#allocation8 + $0x28] sm:$0xff]   ;;  %v1676_v22 = vld [vmem:[#allocation7 + $0x20] sm:$0xff]   ;;  %v1677_v23 = vld [vmem:[#allocation8 + $0x30] sm:$0xff]   ;;  %v682_v2 = vand.u32 15, %v670_v63 }
  0xc8   : > { %1456 = vmatprep.subr.bf16.mxu0 %v1958_v0  ;;  %1476 = vmatprep.subr.bf16.mxu1 %v1958_v0  ;;  %v1678_v24 = vld [vmem:[#allocation7 + $0x28] sm:$0xff]   ;;  %v1679_v25 = vld [vmem:[#allocation8 + $0x38] sm:$0xff]   ;;  %v1680_v26 = vld [vmem:[#allocation7 + $0x30] sm:$0xff]  }
  0xc9   : > { %v1681_v27 = vld [vmem:[#allocation7 + $0x38] sm:$0xff]   ;;  %v1343_v28 = vld [vmem:[%s2439_s2] ss:$0 sm:$0xff]  ;;  %vm1371_vm5 = vmpackc.low %vm1960_vm4, %vm1405_vm2  ;;  %vm1406_vm6 = vcmp.lt.s32.totalorder %v682_v2, 15 }
  0xca   : > { %v1352_v33 = vld [vmem:[%s2440_s3] ss:$0 sm:$0xff]  ;;  %v1683_v57 = vld [vmem:[#allocation10 + $0x8] sm:$0xff]   ;;  %v1684_v59 = vld [vmem:[#allocation10 + $0x10] sm:$0xff]  }
  0xcb   : > { %1457 = vmatpush3.bf16.msra.mxu0 %v1660_v3  ;;  %1477 = vmatpush3.bf16.msra.mxu1 %v1669_v8  ;;  %v1353_v39 = vld [vmem:[%s2441_s4] ss:$0 sm:$0xff]  ;;  %v1685_v60 = vld [vmem:[#allocation10 + $0x18] sm:$0xff]   ;;  %v1687_v62 = vld [vmem:[#allocation10 + $0x28] sm:$0xff]  }
  0xcc   : > { %1458 = vmatprep.subr.bf16.mxu0 %v1958_v0  ;;  %1478 = vmatprep.subr.bf16.mxu1 %v1958_v0  ;;  %v1682_v47 = vld [vmem:[#allocation10] sm:$0xff]   ;;  %v1688_v1 = vld [vmem:[#allocation10 + $0x30] sm:$0xff]   ;;  %v1689_v3 = vld [vmem:[#allocation10 + $0x38] sm:$0xff]  }
  0xcd   : > { %v1686_v61 = vld [vmem:[#allocation10 + $0x20] sm:$0xff]   ;;  %vm1383_vm7 = vmpackc.low %vm1406_vm6, %vm1960_vm4  ;;  %v1692_v6 = vld [vmem:[#allocation11 + $0x10] sm:$0xff]  }
  0xce   : > { %v1690_v4 = vld [vmem:[#allocation11] sm:$0xff]  }
  0xcf   : > { %1459 = vmatpush3.bf16.msra.mxu0 %v1661_v5  ;;  %1479 = vmatpush3.bf16.msra.mxu1 %v1671_v10  ;;  %v1691_v5 = vld [vmem:[#allocation11 + $0x8] sm:$0xff]   ;;  %v1694_v8 = vld [vmem:[#allocation11 + $0x20] sm:$0xff]   ;;  %v1696_v10 = vld [vmem:[#allocation11 + $0x30] sm:$0xff]  }
  0xd0   : > { %1460 = vmatprep.subr.bf16.mxu0 %v1958_v0  ;;  %1480 = vmatprep.subr.bf16.mxu1 %v1958_v0  ;;  %v1387_v35 = vld [vmem:[%s2478_s30] ss:$0 sm:$0xff]  ;;  %s2481_s30 = sld [smem:[#allocation24_spill]] }
  0xd3   : > { %1461 = vmatpush3.bf16.msra.mxu0 %v1662_v7  ;;  %1481 = vmatpush3.bf16.msra.mxu1 %v1673_v12  ;;  %v1693_v7 = vld [vmem:[#allocation11 + $0x18] sm:$0xff]  }
  0xd4   : > { %1462 = vmatprep.subr.bf16.mxu0 %v1958_v0  ;;  %1482 = vmatprep.subr.bf16.mxu1 %v1958_v0 }
  0xd6   : > { %s2391_s15 = scalar_lea.hbm %s2481_s30, %s1404_s8 }
  0xd7   : > { %1463 = vmatpush3.bf16.msra.mxu0 %v1663_v9  ;;  %1483 = vmatpush3.bf16.msra.mxu1 %v1675_v21  ;;  %v1695_v9 = vld [vmem:[#allocation11 + $0x28] sm:$0xff]  }
  0xd8   : > { %1464 = vmatprep.subr.bf16.mxu0 %v1958_v0  ;;  %1484 = vmatprep.subr.bf16.mxu1 %v1958_v0 }
  0xdb   : > { %1465 = vmatpush3.bf16.msra.mxu0 %v1664_v11  ;;  %1485 = vmatpush3.bf16.msra.mxu1 %v1677_v23  ;;  %v1697_v11 = vld [vmem:[#allocation11 + $0x38] sm:$0xff]  }
  0xdc   : > { %1466 = vmatprep.subr.bf16.mxu0 %v1958_v0  ;;  %1486 = vmatprep.subr.bf16.mxu1 %v1958_v0 }
  0xdf   : > { %1467 = vmatpush3.bf16.msra.mxu0 %v1665_v13  ;;  %1487 = vmatpush3.bf16.msra.mxu1 %v1679_v25  ;;  %v1386_v25 = vld [vmem:[%s2477_s1] ss:$0 sm:$0xff]  ;;  %s1203_s1 = sshll.u32 %s531_s24, 4  ;;  %s2393_s1 = int_to_ptr.vmem [resolvable:$true] %s1203_s1 }
  0xe0   : > { %1492 = vmatprep.subr.bf16.mxu0 %v1958_v0  ;;  %1512 = vmatprep.subr.bf16.mxu1 %v1958_v0  ;;  %s1868_s21 = scalar_lea.vmem %s2393_s1, 256 }
  0xe1   : > { %p1869_p6 = scmp.ne.s32.totalorder %s2393_s1, %s1868_s21 }
  0xe2   : > { %1469 = vmatmul.mubr.bf16.vlgmr.msra.gmra.mrb[0].mxu0 %v535_v17 }
  0xe3   : > { %1493 = vmatpush3.bf16.msra.mxu0 %v1668_v16  ;;  %1508 = vmatprep.mubr.msk.bf16.mxu0 %vm1959_vm0, %v1958_v0  ;;  %p1870_p12 = pnand %p1869_p6, %p2482_p9 }
  0xe4   : > { %1494 = vmatprep.subr.bf16.mxu0 %v1958_v0 }
  0xe5   : > { %p1871_p1 = pneg %p1870_p12 }
  0xe7   : > { %1495 = vmatpush3.bf16.msra.mxu0 %v1670_v18 }
  0xe8   : > { %1496 = vmatprep.subr.bf16.mxu0 %v1958_v0 }
  0xeb   : > { %1497 = vmatpush3.bf16.msra.mxu0 %v1672_v19 }
  0xec   : > { %1498 = vmatprep.subr.bf16.mxu0 %v1958_v0 }
  0xef   : > { %1499 = vmatpush3.bf16.msra.mxu0 %v1674_v20 }
  0xf0   : > { %1500 = vmatprep.subr.bf16.mxu0 %v1958_v0 }
  0xf3   : > { %1501 = vmatpush3.bf16.msra.mxu0 %v1676_v22 }
  0xf4   : > { %1502 = vmatprep.subr.bf16.mxu0 %v1958_v0 }
  0xf7   : > { %1503 = vmatpush3.bf16.msra.mxu0 %v1678_v24 }
  0xf8   : > { %1504 = vmatprep.subr.bf16.mxu0 %v1958_v0 }
  0xfb   : > { %1505 = vmatpush3.bf16.msra.mxu0 %v1680_v26 }
  0xfc   : > { %1506 = vmatprep.subr.bf16.mxu0 %v1958_v0 }
  0xff   : > { %1507 = vmatpush3.bf16.msra.mxu0 %v1681_v27 }
 0x100   : > { %1532 = vmatprep.subr.bf16.mxu0 %v1958_v0 }
 0x1b5   : > { %v641_v30 = vpop.f32.mrb[0].mxu0 }
 0x1b6   : > { %v642_v31 = vadd.f32 %v1343_v28, %v641_v30  ;;  %v1470_v32 = vpop.f32.mrb[1].mxu0 }
 0x1b7   : > { %v644_v34 = vpop.f32.mrb[2].mxu0 }
 0x1b8   : > { %v648_v36 = vmax.f32 %v642_v31, 0.0  ;;  %v645_v37 = vadd.f32 %v1343_v28, %v644_v34  ;;  %v1471_v38 = vpop.f32.mrb[3].mxu0 }
 0x1ba   : > { %v657_v40 = vmul.f32 %v1352_v33, %v648_v36  ;;  %v649_v41 = vmax.f32 %v645_v37, 0.0 }
 0x1bc   : > { %v666_v43 = vadd.f32 %v1353_v39, %v657_v40  ;;  %v658_v44 = vmul.f32 %v1352_v33, %v649_v41 }
 0x1be   : > { %v667_v45 = vadd.f32 %v1353_v39, %v658_v44  ;;  %v697_v46 = vrot.slane %v666_v43, 7  ;;  %v711_v48 = vrot.slane %v666_v43, 1  ;;  %v1396_v39 = vld [vmem:[%s2479_s17] ss:$0 sm:$0xff]  ;;  %s1872_s17 = sshll.u32 %s1961_s12, 4  ;;  %s1873_s17 = int_to_ptr.vmem [resolvable:$false] %s1872_s17 }
 0x1bf   : > { %v1397_v44 = vld [vmem:[%s2480_s18] ss:$0 sm:$0xff]  ;;  %s1874_s11 = scalar_lea.vmem %s1873_s17, 512  ;;  %p1875_p13 = scmp.lt.s32.totalorder %s2393_s1, %s1873_s17 }
 0x1c0   : > { %v698_v49 = vrot.slane %v667_v45, 7  ;;  %v712_v50 = vrot.slane %v667_v45, 1  ;;  %v723_v51 = vpack.c.bf16 %v667_v45, %v666_v43  ;;  %p1876_p0 = scmp.lt.s32.totalorder %s1874_s11, %s1868_s21 }
 0x1c2   : > { %1489 = vmatmul.mubr.bf16.vlgmr.msra.gmra.mrb[0].mxu1 %v723_v51  ;;  %v700_v52 = vsel %vm699_vm1, %v697_v46, %v698_v49  ;;  %v701_v53 = vsel %vm699_vm1, %v698_v49, %v697_v46  ;;  %v714_v54 = vsel %vm713_vm3, %v711_v48, %v712_v50  ;;  %v715_v55 = vsel %vm713_vm3, %v712_v50, %v711_v48  ;;  %p1877_p2 = por %p1876_p0, %p1875_p13 }
 0x1c3   : > { %1513 = vmatpush3.bf16.msra.mxu1 %v1682_v47  ;;  %v1372_v56 = vpack.c.bf16 %v700_v52, %v701_v53  ;;  %1528 = vmatprep.mubr.msk.bf16.mxu1 %vm1959_vm0, %v1958_v0  ;;  %v1384_v58 = vpack.c.bf16 %v715_v55, %v714_v54 }
 0x1c4   : > { %1514 = vmatprep.subr.bf16.mxu1 %v1958_v0  ;;  %p1878_p7 = pnand %p1877_p2, %p1871_p1 }
 0x1c5   : > { %1509 = vmatmul.mubr.msk.bf16.vlgmr.msra.gmra.mrb[4].mxu0 %vm1371_vm5, %v1372_v56 }
 0x1c6   : > { %1548 = vmatprep.mubr.msk.bf16.mxu0 %vm1959_vm0, %v1958_v0  ;;  %1533 = vmatpush3.bf16.msra.mxu0 %v1690_v4 }
 0x1c7   : > { %1515 = vmatpush3.bf16.msra.mxu1 %v1683_v57  ;;  %1534 = vmatprep.subr.bf16.mxu0 %v1958_v0 }
 0x1c8   : > { %1516 = vmatprep.subr.bf16.mxu1 %v1958_v0 }
 0x1ca   : > { %1535 = vmatpush3.bf16.msra.mxu0 %v1691_v5 }
 0x1cb   : > { %1517 = vmatpush3.bf16.msra.mxu1 %v1684_v59  ;;  %1536 = vmatprep.subr.bf16.mxu0 %v1958_v0 }
 0x1cc   : > { %1518 = vmatprep.subr.bf16.mxu1 %v1958_v0 }
 0x1ce   : > { %1537 = vmatpush3.bf16.msra.mxu0 %v1692_v6 }
 0x1cf   : > { %1519 = vmatpush3.bf16.msra.mxu1 %v1685_v60  ;;  %1538 = vmatprep.subr.bf16.mxu0 %v1958_v0 }
 0x1d0   : > { %1520 = vmatprep.subr.bf16.mxu1 %v1958_v0 }
 0x1d2   : > { %1539 = vmatpush3.bf16.msra.mxu0 %v1693_v7 }
 0x1d3   : > { %1521 = vmatpush3.bf16.msra.mxu1 %v1686_v61  ;;  %1540 = vmatprep.subr.bf16.mxu0 %v1958_v0 }
 0x1d4   : > { %1522 = vmatprep.subr.bf16.mxu1 %v1958_v0 }
 0x1d6   : > { %1541 = vmatpush3.bf16.msra.mxu0 %v1694_v8 }
 0x1d7   : > { %1523 = vmatpush3.bf16.msra.mxu1 %v1687_v62  ;;  %1542 = vmatprep.subr.bf16.mxu0 %v1958_v0 }
 0x1d8   : > { %1524 = vmatprep.subr.bf16.mxu1 %v1958_v0 }
 0x1da   : > { %1543 = vmatpush3.bf16.msra.mxu0 %v1695_v9 }
 0x1db   : > { %1525 = vmatpush3.bf16.msra.mxu1 %v1688_v1  ;;  %1544 = vmatprep.subr.bf16.mxu0 %v1958_v0 }
 0x1dc   : > { %1526 = vmatprep.subr.bf16.mxu1 %v1958_v0 }
 0x1de   : > { %1545 = vmatpush3.bf16.msra.mxu0 %v1696_v10 }
 0x1df   : > { %1527 = vmatpush3.bf16.msra.mxu1 %v1689_v3  ;;  %1546 = vmatprep.subr.bf16.mxu0 %v1958_v0 }
 0x1e2   : > { %1529 = vmatmul.mubr.msk.bf16.vlgmr.msra.gmra.mrb[4].mxu1 %vm1383_vm7, %v1384_v58  ;;  %1547 = vmatpush3.bf16.msra.mxu0 %v1697_v11 }
 0x295   : > { %v838_v12 = vpop.f32.mrb[0].mxu1 }
 0x296   : > { %v1490_v13 = vpop.f32.mrb[1].mxu1 }
 0x297   : > { %v841_v16 = vpop.f32.mrb[2].mxu1 }
 0x298   : > { %v1491_v17 = vpop.f32.mrb[3].mxu1  ;;  %v927_v18 = vpop.f32.mrb[4].mxu0 }
 0x299   : > { %v928_v19 = vadd.f32 %v927_v18, %v838_v12  ;;  %v1510_v20 = vpop.f32.mrb[5].mxu0 }
 0x29a   : > { %v930_v21 = vpop.f32.mrb[6].mxu0 }
 0x29b   : > { %v931_v22 = vadd.f32 %v930_v21, %v841_v16  ;;  %v1511_v23 = vpop.f32.mrb[7].mxu0 }
 0x2b5   : > { %v1032_v24 = vpop.f32.mrb[4].mxu1 }
 0x2b6   : > { %v1039_v26 = vadd.f32 %v1032_v24, %v928_v19  ;;  %v1530_v27 = vpop.f32.mrb[5].mxu1 }
 0x2b7   : > { %v1035_v0 = vpop.f32.mrb[6].mxu1 }
 0x2b8   : > { %v1048_v28 = vadd.f32 %v1386_v25, %v1039_v26  ;;  %v1040_v29 = vadd.f32 %v1035_v0, %v931_v22  ;;  %v1531_v30 = vpop.f32.mrb[7].mxu1 }
 0x2ba   : > { %v1049_v31 = vadd.f32 %v1386_v25, %v1040_v29  ;;  %v1050_v32 = vmax.f32 %v1048_v28, 0.0 }
 0x2bc   : > { %v1051_v33 = vmax.f32 %v1049_v31, 0.0 }
 0x2be   : > { %v1052_v34 = vpack.c.bf16 %v1051_v33, %v1050_v32 }
 0x2c0   : > { %1549 = vmatmul.mubr.bf16.vlgmr.msra.gmra.mrb[8].mxu0 %v1052_v34 }
 0x393   : > { %v1158_v36 = vpop.f32.mrb[8].mxu0 }
 0x394   : > { %v1159_v37 = vadd.f32 %v1387_v35, %v1158_v36  ;;  %v1550_v38 = vpop.f32.mrb[9].mxu0 }
 0x395   : > { %v1161_v40 = vpop.f32.mrb[10].mxu0 }
 0x396   : > { %v1165_v41 = vmax.f32 %v1159_v37, 0.0  ;;  %v1162_v42 = vadd.f32 %v1387_v35, %v1161_v40  ;;  %v1551_v43 = vpop.f32.mrb[11].mxu0 }
 0x398   : > { %v1174_v45 = vmul.f32 %v1396_v39, %v1165_v41  ;;  %v1166_v46 = vmax.f32 %v1162_v42, 0.0 }
 0x39a   : > { %v1183_v47 = vadd.f32 %v1397_v44, %v1174_v45  ;;  %v1175_v48 = vmul.f32 %v1396_v39, %v1166_v46 }
 0x39c   : > { %v1185_v49 = vadd.f32 %v1183_v47, %v2319_v14  ;;  %v1184_v50 = vadd.f32 %v1397_v44, %v1175_v48 }
 0x39e   : > { %1187 = vst [vmem:[%s531_s24] sm:$0xff] %v1185_v49  ;;  %v1186_v51 = vadd.f32 %v1184_v50, %v2322_v15 }
 0x3a0   : > { %1188 = vst [vmem:[%s531_s24 + $0x8] sm:$0xff] %v1186_v51 }
 0x3a1   : > { %1881 = shalt.err (!%p1878_p7)
}
 0x3a2   : > { %s1882_s20 = scalar_lea.hbm %s2391_s15, 256  ;;  %s1886_s24 = scalar_lea.hbm %s2481_s30, 1024 }
 0x3a3   : > { %p1883_p5 = scmp.ne.s32.totalorder %s2391_s15, %s1882_s20  ;;  %p1887_p3 = scmp.lt.u32.totalorder %s2391_s15, %s2481_s30 }
 0x3a4   : > { %p1888_p4 = scmp.lt.u32.totalorder %s1886_s24, %s1882_s20  ;;  %p1890_p6 = scmp.lt.u32.totalorder %s1882_s20, %s2391_s15 }
 0x3a5   : > { %p1884_p10 = pnand %p1883_p5, %p2482_p9 }
 0x3a6   : > { %p1889_p8 = por %p1888_p4, %p1887_p3 }
 0x3a7   : > { %p1885_p11 = pneg %p1884_p10 }
 0x3a8   : > { %p1891_p12 = por %p1890_p6, %p1889_p8 }
 0x3aa   : > { %p1892_p1 = pnand %p1891_p12, %p1885_p11 }
 0x3ac   : > { %1895 = shalt.err (!%p1892_p1)
}
 0x3ad   : > { %s1962_s21 = smov 128   ;;  %s1963_s12 = smov 8  }
 0x3ae   : > { %1574 = dma.vmem_to_hbm [thread:$0]  (%p2482_p9), %s2393_s1, 256, %s2391_s15, %s1190_s14, %s1962_s21, %s1962_s21, %s1963_s12  }
 0x3af PF: > { %p1611_p13 = scmp.ge.s32.totalorder %s1946_s28, 2  ;;  %s1218_s17 = sand.u32 1, %s1934_s25  }
 0x3b0   : > { %p2483_p0 = scmp.ne.s32.totalorder %s2468_s23, 0  ;;  %s1219_s11 = scalar_lea.sflag [#allocation4], %s1218_s17 }
 0x3b2   : > { %p1597_p2 = pnand %p1611_p13, %p2483_p0 }
 0x3b4   : > { %1929 = dma.done.wait (!%p1597_p2), %s1219_s11, 256  }
 0x3b5   : > { %1931 = vsyncadd (!%p1597_p2), %s1219_s11, 4294967040  ;;  %p29_p7 = scmp.ge.s32.totalorder %s2206_s16, 6   ;;  %s2484_s25 = smov %s1938_s26 }
 0x3b6   : > { %s2485_s26 = smov %s1942_s27  ;;  %s2486_s27 = smov %s2218_s10 }
 0x3b7   : > { %s2487_s28 = smov %s2206_s16  ;;  %31 = sbr.rel (!%p29_p7) target bundleno = 15 (0xf), region = 137 }
 0x3be   :  { %1224 = vsyncpa [#allocation3], 1 }
 0x3bf   :  { %1226 = vsyncpa [#allocation3 + $0x1], 1 }
 0x3c0   :  { %1227 = vsyncpa [#allocation6], 1 }
 0x3c1   :  { %1228 = vsyncpa [#allocation9], 1 }
 0x3c2   :  { %1229 = vsyncpa [#allocation12], 1 }
 0x3c3   :  { %1230 = vsyncpa [#allocation4], 1 }
 0x3c4   :  { %1232 = vsyncpa [#allocation4 + $0x1], 1 }

</bundles_post_ra>
